<compile_context>
chip_gen: v5e
topology: v5e:2x2
jax: 0.10.0
libtpu: 0.0.40
codegen_flags: <defaults>
</compile_context>

<pallas_src>
import functools

import jax
import jax.numpy as jnp
from jax.experimental import pallas as pl
from jax.experimental.pallas import tpu as pltpu


# ----------------------------- in-kernel math helpers -----------------------------

def _layernorm(t, g, b, eps=1e-5):
    # t: (M, C) f32; g, b: (1, C) f32.  Biased variance, matching torch.nn.LayerNorm.
    mu = jnp.mean(t, axis=-1, keepdims=True)
    var = jnp.mean((t - mu) ** 2, axis=-1, keepdims=True)
    return (t - mu) * jax.lax.rsqrt(var + eps) * g + b


def _gelu_tanh(x):
    # TODO(synk): FeedForward definition not provided in the source file; using the
    # standard Linear(dim,4*dim) -> GELU(tanh approx) -> Linear(4*dim,dim) MLP.
    c = 0.7978845608028654  # sqrt(2/pi)
    return 0.5 * x * (1.0 + jnp.tanh(c * (x + 0.044715 * x * x * x)))


# ----------------------------------- kernel ---------------------------------------

def basic_block_kernel(num_heads, compute_dtype, ew_dtype, approx_recip,
                       z_ref, x_ref,
                       g1_ref, b1_ref, wqkv1_ref, pw1_ref, pb1_ref,
                       g2_ref, b2_ref, wq2_ref, wkv2_ref, pw2_ref, pb2_ref,
                       g3_ref, b3_ref, fw1_ref, fb1_ref, fw2_ref, fb2_ref,
                       out_ref):
    Bb, Nq, C = z_ref.shape
    _, Nkv, Ckv = x_ref.shape
    H = num_heads
    dh = C // H
    M = Bb * Nq

    # Hoist small parameters once (JAX does not CSE broadcast_in_dim).
    g1 = g1_ref[...]; b1 = b1_ref[...]
    g2 = g2_ref[...]; b2 = b2_ref[...]
    g3 = g3_ref[...]; b3 = b3_ref[...]
    pb1 = pb1_ref[...]; pb2 = pb2_ref[...]
    fb1 = fb1_ref[...]; fb2 = fb2_ref[...]

    # Fold the batch block onto the M/sublane axis for all dense projections.
    # TODO(synk): for arbitrary sequence lengths, pad Nq/Nkv to multiples of 8
    # wrapper-side (with attention masking) so this merge is a free relayout.
    z = z_ref[...].astype(jnp.float32).reshape(M, C)          # residual stream, f32
    xkv = x_ref[...].reshape(Bb * Nkv, Ckv)                    # only feeds matmuls

    def mm(a, w_ref):
        # bf16 (or f32) MXU matmul with f32 accumulation.
        return jnp.dot(a.astype(compute_dtype), w_ref[...],
                       preferred_element_type=jnp.float32)

    def attention(q3, q_off, kv3, k_off, v_off, pw_ref, pb):
        # q3: (Bb, Nq, *) compute_dtype; kv3: (Bb, Nk, *) compute_dtype.
        # Scores/AV per head (K=dh is inherent), batched over the batch axis with
        # 3-D einsums; softmax normalization deferred to the (Bb, Nq, dh) output;
        # heads concatenated once -> a single (M, C) @ (C, C) output projection.
        o_heads = []
        for h in range(H):                                 # static unroll over heads
            qh = q3[:, :, q_off + h * dh: q_off + (h + 1) * dh]
            kh = kv3[:, :, k_off + h * dh: k_off + (h + 1) * dh]
            vh = kv3[:, :, v_off + h * dh: v_off + (h + 1) * dh]
            # NOTE: scale is folded into the Q weights wrapper-side -> no `* scale`.
            s = jnp.einsum('bqd,bkd->bqk', qh, kh,
                           preferred_element_type=jnp.float32)
            m = jnp.max(s, axis=-1, keepdims=True)
            e = jnp.exp(s - m)                             # unnormalized, f32
            l = jnp.sum(e, axis=-1, keepdims=True)
            o = jnp.einsum('bqk,bkd->bqd', e.astype(compute_dtype), vh,
                           preferred_element_type=jnp.float32)   # (Bb, Nq, dh)
            o = o * pl.reciprocal(l, approx=approx_recip)  # deferred softmax norm
            o_heads.append(o.reshape(M, dh))
        o_full = jnp.concatenate(o_heads, axis=-1).astype(compute_dtype)  # (M, C)
        return jnp.dot(o_full, pw_ref[...],
                       preferred_element_type=jnp.float32) + pb

    # --- z = z + attn1(norm1(z), norm1(z)) : fused (C, 3C) QKV projection ---
    zn = _layernorm(z, g1, b1)
    qkv1 = mm(zn, wqkv1_ref).astype(compute_dtype).reshape(Bb, Nq, 3 * C)
    z = z + attention(qkv1, 0, qkv1, C, 2 * C, pw1_ref, pb1)

    # --- z = z + attn2(norm2(z), x) : fused (Ckv, 2C) KV projection ---
    zn = _layernorm(z, g2, b2)
    q2 = mm(zn, wq2_ref).astype(compute_dtype).reshape(Bb, Nq, C)
    kv2 = mm(xkv, wkv2_ref).astype(compute_dtype).reshape(Bb, Nkv, 2 * C)
    z = z + attention(q2, 0, kv2, 0, C, pw2_ref, pb2)

    # --- z = z + ff(norm3(z)) ---
    zn = _layernorm(z, g3, b3)
    h1 = _gelu_tanh((mm(zn, fw1_ref) + fb1).astype(ew_dtype))   # bf16 only on v6e/v7x
    z = z + (mm(h1, fw2_ref) + fb2)

    out_ref[...] = z.reshape(Bb, Nq, C).astype(out_ref.dtype)


# ----------------------------------- wrapper ---------------------------------------

def _device_kind():
    try:
        devs = jax.devices()
        if devs and devs[0].platform == "tpu":
            return devs[0].device_kind.lower()
    except Exception:
        pass
    return ""


def _pick_batch_block(B, Nq, max_rows, min_grid=2):
    """Largest divisor of B keeping the folded M dim modest AND the grid >= min_grid
    steps (when B allows it) so both v7x TensorCores get parallel work."""
    best = 1
    for cand in range(1, B + 1):
        if B % cand != 0:
            continue
        if cand * Nq > max_rows:
            continue
        if B >= min_grid and (B // cand) < min_grid:
            continue
        best = cand
    return best


def _vmem_limit_bytes(bblk, Nq, Nkv, C, Ckv, hidden, packed,
                      seq_itemsize, out_itemsize, cap_bytes):
    """Rough footprint: double-buffered seq in/out blocks + weights + live f32
    intermediates (qkv, h1, residual/LN temporaries, score tensor), x2 slack."""
    M = bblk * Nq
    blocks = 2 * seq_itemsize * (M * C + bblk * Nkv * Ckv) + 2 * out_itemsize * M * C
    weights = 2 * sum(int(p.size) * p.dtype.itemsize for p in packed)
    inter = 4 * (M * 3 * C + M * hidden + 4 * M * C + bblk * Nq * Nkv * 4)
    est = blocks + weights + inter
    return int(min(cap_bytes, max(32 << 20, 2 * est)))


def basic_block(z, x, params, num_heads, *, use_bf16=True):
    B, Nq, C = z.shape
    _, Nkv, Ckv = x.shape
    (g1, b1, wq1, wk1, wv1, pw1, pb1,
     g2, b2, wq2, wk2, wv2, pw2, pb2,
     g3, b3, fw1, fb1, fw2, fb2) = params

    cdt = jnp.bfloat16 if use_bf16 else jnp.float32
    dh = C // num_heads
    scale = dh ** (-0.5)
    ff_hidden = fw1.shape[1]

    kind = _device_kind()
    is_v7 = ("v7" in kind) or ("tpu7" in kind)
    is_v6 = "v6" in kind
    # bf16 elementwise (GELU / FF hidden) only where the VPU/EUP supports it.
    ew_dtype = jnp.bfloat16 if (use_bf16 and (is_v6 or is_v7)) else jnp.float32

    # Fuse projection weights wrapper-side (attn1 shares its input for q/k/v, attn2
    # shares x for k/v), fold the attention scale into the Q columns, and cast
    # matmul weights to the compute dtype.  Biases / LayerNorm params stay f32.
    wqkv1 = jnp.concatenate([wq1 * scale, wk1, wv1], axis=1).astype(cdt)   # (C, 3C)
    wq2s = (wq2 * scale).astype(cdt)                                       # (C, C)
    wkv2 = jnp.concatenate([wk2, wv2], axis=1).astype(cdt)                 # (Ckv, 2C)
    packed = [g1, b1, wqkv1, pw1.astype(cdt), pb1,
              g2, b2, wq2s, wkv2, pw2.astype(cdt), pb2,
              g3, b3, fw1.astype(cdt), fb1, fw2.astype(cdt), fb2]

    # Generation-aware block sizing: smaller on v7x (64 MiB VMEM), larger on v6e.
    max_rows = 256 if is_v7 else (1024 if is_v6 else 512)
    bblk = _pick_batch_block(B, Nq, max_rows)
    grid = (B // bblk,)

    # Halve the per-step sequence DMA on the fast path (most valuable on v5e HBM BW);
    # residual / LayerNorm math is still done in f32 inside the kernel.
    z_in = z.astype(cdt) if use_bf16 else z
    x_in = x.astype(cdt) if use_bf16 else x

    cap = (56 << 20) if is_v7 else (96 << 20)
    vmem_limit = _vmem_limit_bytes(bblk, Nq, Nkv, C, Ckv, ff_hidden, packed,
                                   z_in.dtype.itemsize, z.dtype.itemsize, cap)

    def seq_spec(n, c):
        return pl.BlockSpec((bblk, n, c), lambda i: (i, 0, 0))

    def full_spec(shape):
        # All params are 2-D; constant index map -> weights stay VMEM-resident.
        return pl.BlockSpec(shape, lambda i: (0, 0))

    in_specs = ([seq_spec(Nq, C), seq_spec(Nkv, Ckv)]
                + [full_spec(p.shape) for p in packed])

    kernel = functools.partial(basic_block_kernel, num_heads, cdt, ew_dtype, use_bf16)

    return pl.pallas_call(
        kernel,
        out_shape=jax.ShapeDtypeStruct((B, Nq, C), z.dtype),
        grid=grid,
        in_specs=in_specs,
        out_specs=seq_spec(Nq, C),
        compiler_params=pltpu.CompilerParams(
            dimension_semantics=("parallel",),
            vmem_limit_bytes=vmem_limit),
    )(z_in, x_in, *packed)


# ----------------------------- pure-JAX reference ----------------------------------

def reference_basic_block(z, x, params, num_heads):
    (g1, b1, wq1, wk1, wv1, pw1, pb1,
     g2, b2, wq2, wk2, wv2, pw2, pb2,
     g3, b3, fw1, fb1, fw2, fb2) = params

    def ln(t, g, b):
        mu = t.mean(-1, keepdims=True)
        var = ((t - mu) ** 2).mean(-1, keepdims=True)
        return (t - mu) / jnp.sqrt(var + 1e-5) * g + b

    def attn(q_in, kv_in, wq, wk, wv, pw, pb):
        B, Nq, C = q_in.shape
        Nkv = kv_in.shape[1]
        H, Dh = num_heads, C // num_heads
        q = (q_in @ wq).reshape(B, Nq, H, Dh).transpose(0, 2, 1, 3)
        k = (kv_in @ wk).reshape(B, Nkv, H, Dh).transpose(0, 2, 1, 3)
        v = (kv_in @ wv).reshape(B, Nkv, H, Dh).transpose(0, 2, 1, 3)
        s = jnp.einsum('bhqd,bhkd->bhqk', q, k) * (Dh ** -0.5)
        a = jax.nn.softmax(s, axis=-1)
        o = jnp.einsum('bhqk,bhkd->bhqd', a, v).transpose(0, 2, 1, 3).reshape(B, Nq, C)
        return o @ pw + pb

    def gelu_tanh(t):
        c = 0.7978845608028654
        return 0.5 * t * (1.0 + jnp.tanh(c * (t + 0.044715 * t ** 3)))

    z = z + attn(ln(z, g1, b1), ln(z, g1, b1), wq1, wk1, wv1, pw1, pb1)
    z = z + attn(ln(z, g2, b2), x, wq2, wk2, wv2, pw2, pb2)
    zn = ln(z, g3, b3)
    z = z + (gelu_tanh(zn @ fw1 + fb1) @ fw2 + fb2)
    return z


# ----------------------------------- main ------------------------------------------

if __name__ == "__main__":
    B, Nq, Nkv = 2, 8, 16
    dim, kv_dim = 32, 48
    num_heads = 4
    ff_hidden = 4 * dim

    key = jax.random.PRNGKey(0)
    keys = jax.random.split(key, 20)

    def w(k, shape, scale=0.05):
        return scale * jax.random.normal(k, shape, dtype=jnp.float32)

    # LayerNorm params (stored as (1, C) for clean lane-axis broadcast)
    g1 = jnp.ones((1, dim), jnp.float32) + 0.01 * jnp.arange(dim, dtype=jnp.float32)[None, :]
    b1 = 0.01 * jnp.arange(dim, dtype=jnp.float32)[None, :]
    g2 = jnp.ones((1, dim), jnp.float32) - 0.005 * jnp.arange(dim, dtype=jnp.float32)[None, :]
    b2 = -0.02 * jnp.ones((1, dim), jnp.float32)
    g3 = jnp.ones((1, dim), jnp.float32)
    b3 = 0.03 * jnp.ones((1, dim), jnp.float32)

    # attn1 (kv_dim == dim), qkv_bias=False
    wq1 = w(keys[0], (dim, dim)); wk1 = w(keys[1], (dim, dim)); wv1 = w(keys[2], (dim, dim))
    pw1 = w(keys[3], (dim, dim)); pb1 = w(keys[4], (1, dim))
    # attn2 (kv projections map kv_dim -> dim)
    wq2 = w(keys[5], (dim, dim)); wk2 = w(keys[6], (kv_dim, dim)); wv2 = w(keys[7], (kv_dim, dim))
    pw2 = w(keys[8], (dim, dim)); pb2 = w(keys[9], (1, dim))
    # feed-forward
    fw1 = w(keys[10], (dim, ff_hidden)); fb1 = w(keys[11], (1, ff_hidden))
    fw2 = w(keys[12], (ff_hidden, dim)); fb2 = w(keys[13], (1, dim))

    params = [g1, b1, wq1, wk1, wv1, pw1, pb1,
              g2, b2, wq2, wk2, wv2, pw2, pb2,
              g3, b3, fw1, fb1, fw2, fb2]

    z = jax.random.normal(keys[14], (B, Nq, dim), dtype=jnp.float32)
    x = jax.random.normal(keys[15], (B, Nkv, kv_dim), dtype=jnp.float32)

    ref = jax.block_until_ready(reference_basic_block(z, x, params, num_heads))

    # Exactness check of the kernel structure in f32 ...
    out_f32 = jax.block_until_ready(basic_block(z, x, params, num_heads, use_bf16=False))
    assert out_f32.shape == (B, Nq, dim)
    assert jnp.allclose(out_f32, ref, atol=1e-4, rtol=1e-4), (
        f"f32 max abs err = {jnp.max(jnp.abs(out_f32 - ref))}")

    # ... and the fast path (bf16 inputs/matmuls, approx reciprocal; looser tolerance).
    out_bf16 = jax.block_until_ready(basic_block(z, x, params, num_heads, use_bf16=True))
    assert out_bf16.shape == (B, Nq, dim)
    assert jnp.allclose(out_bf16, ref, atol=3e-2, rtol=3e-2), (
        f"bf16 max abs err = {jnp.max(jnp.abs(out_bf16 - ref))}")

    print("KERNEL_OK")
</pallas_src>

<mosaic_0001>
module attributes {stable_mosaic.version = 11 : i64} {
  func.func @basic_block_kernel(%arg0: i32, %arg1: memref<1x8x32xf32, #tpu.memory_space<vmem>>, %arg2: memref<1x16x48xf32, #tpu.memory_space<vmem>>, %arg3: memref<1x32xf32, #tpu.memory_space<vmem>>, %arg4: memref<1x32xf32, #tpu.memory_space<vmem>>, %arg5: memref<32x96xf32, #tpu.memory_space<vmem>>, %arg6: memref<32x32xf32, #tpu.memory_space<vmem>>, %arg7: memref<1x32xf32, #tpu.memory_space<vmem>>, %arg8: memref<1x32xf32, #tpu.memory_space<vmem>>, %arg9: memref<1x32xf32, #tpu.memory_space<vmem>>, %arg10: memref<32x32xf32, #tpu.memory_space<vmem>>, %arg11: memref<48x64xf32, #tpu.memory_space<vmem>>, %arg12: memref<32x32xf32, #tpu.memory_space<vmem>>, %arg13: memref<1x32xf32, #tpu.memory_space<vmem>>, %arg14: memref<1x32xf32, #tpu.memory_space<vmem>>, %arg15: memref<1x32xf32, #tpu.memory_space<vmem>>, %arg16: memref<32x128xf32, #tpu.memory_space<vmem>>, %arg17: memref<1x128xf32, #tpu.memory_space<vmem>>, %arg18: memref<128x32xf32, #tpu.memory_space<vmem>>, %arg19: memref<1x32xf32, #tpu.memory_space<vmem>>, %arg20: memref<1x8x32xf32, #tpu.memory_space<vmem>>) attributes {dimension_semantics = [#tpu.dimension_semantics<parallel>], iteration_bounds = array<i64: 2>, scalar_prefetch = 0 : i64, scratch_operands = 0 : i64, tpu.core_type = #tpu.core_type<tc>, window_params = [{transform_indices = @transform_0, window_bounds = array<i64: 1, 8, 32>}, {transform_indices = @transform_1, window_bounds = array<i64: 1, 16, 48>}, {pipeline_mode = #tpu.pipeline_mode<synchronous>, transform_indices = @transform_2, window_bounds = array<i64: 1, 32>}, {pipeline_mode = #tpu.pipeline_mode<synchronous>, transform_indices = @transform_3, window_bounds = array<i64: 1, 32>}, {pipeline_mode = #tpu.pipeline_mode<synchronous>, transform_indices = @transform_4, window_bounds = array<i64: 32, 96>}, {pipeline_mode = #tpu.pipeline_mode<synchronous>, transform_indices = @transform_5, window_bounds = array<i64: 32, 32>}, {pipeline_mode = #tpu.pipeline_mode<synchronous>, transform_indices = @transform_6, window_bounds = array<i64: 1, 32>}, {pipeline_mode = #tpu.pipeline_mode<synchronous>, transform_indices = @transform_7, window_bounds = array<i64: 1, 32>}, {pipeline_mode = #tpu.pipeline_mode<synchronous>, transform_indices = @transform_8, window_bounds = array<i64: 1, 32>}, {pipeline_mode = #tpu.pipeline_mode<synchronous>, transform_indices = @transform_9, window_bounds = array<i64: 32, 32>}, {pipeline_mode = #tpu.pipeline_mode<synchronous>, transform_indices = @transform_10, window_bounds = array<i64: 48, 64>}, {pipeline_mode = #tpu.pipeline_mode<synchronous>, transform_indices = @transform_11, window_bounds = array<i64: 32, 32>}, {pipeline_mode = #tpu.pipeline_mode<synchronous>, transform_indices = @transform_12, window_bounds = array<i64: 1, 32>}, {pipeline_mode = #tpu.pipeline_mode<synchronous>, transform_indices = @transform_13, window_bounds = array<i64: 1, 32>}, {pipeline_mode = #tpu.pipeline_mode<synchronous>, transform_indices = @transform_14, window_bounds = array<i64: 1, 32>}, {pipeline_mode = #tpu.pipeline_mode<synchronous>, transform_indices = @transform_15, window_bounds = array<i64: 32, 128>}, {pipeline_mode = #tpu.pipeline_mode<synchronous>, transform_indices = @transform_16, window_bounds = array<i64: 1, 128>}, {pipeline_mode = #tpu.pipeline_mode<synchronous>, transform_indices = @transform_17, window_bounds = array<i64: 128, 32>}, {pipeline_mode = #tpu.pipeline_mode<synchronous>, transform_indices = @transform_18, window_bounds = array<i64: 1, 32>}, {transform_indices = @transform_19, window_bounds = array<i64: 1, 8, 32>}]} {
    %c0 = arith.constant 0 : index
    %c0_0 = arith.constant 0 : index
    %0 = vector.load %arg3[%c0, %c0_0] : memref<1x32xf32, #tpu.memory_space<vmem>>, vector<1x32xf32>
    %c0_1 = arith.constant 0 : index
    %c0_2 = arith.constant 0 : index
    %1 = vector.load %arg4[%c0_1, %c0_2] : memref<1x32xf32, #tpu.memory_space<vmem>>, vector<1x32xf32>
    %c0_3 = arith.constant 0 : index
    %c0_4 = arith.constant 0 : index
    %2 = vector.load %arg8[%c0_3, %c0_4] : memref<1x32xf32, #tpu.memory_space<vmem>>, vector<1x32xf32>
    %c0_5 = arith.constant 0 : index
    %c0_6 = arith.constant 0 : index
    %3 = vector.load %arg9[%c0_5, %c0_6] : memref<1x32xf32, #tpu.memory_space<vmem>>, vector<1x32xf32>
    %c0_7 = arith.constant 0 : index
    %c0_8 = arith.constant 0 : index
    %4 = vector.load %arg14[%c0_7, %c0_8] : memref<1x32xf32, #tpu.memory_space<vmem>>, vector<1x32xf32>
    %c0_9 = arith.constant 0 : index
    %c0_10 = arith.constant 0 : index
    %5 = vector.load %arg15[%c0_9, %c0_10] : memref<1x32xf32, #tpu.memory_space<vmem>>, vector<1x32xf32>
    %c0_11 = arith.constant 0 : index
    %c0_12 = arith.constant 0 : index
    %6 = vector.load %arg7[%c0_11, %c0_12] : memref<1x32xf32, #tpu.memory_space<vmem>>, vector<1x32xf32>
    %c0_13 = arith.constant 0 : index
    %c0_14 = arith.constant 0 : index
    %7 = vector.load %arg13[%c0_13, %c0_14] : memref<1x32xf32, #tpu.memory_space<vmem>>, vector<1x32xf32>
    %c0_15 = arith.constant 0 : index
    %c0_16 = arith.constant 0 : index
    %8 = vector.load %arg17[%c0_15, %c0_16] : memref<1x128xf32, #tpu.memory_space<vmem>>, vector<1x128xf32>
    %c0_17 = arith.constant 0 : index
    %c0_18 = arith.constant 0 : index
    %9 = vector.load %arg19[%c0_17, %c0_18] : memref<1x32xf32, #tpu.memory_space<vmem>>, vector<1x32xf32>
    %c0_19 = arith.constant 0 : index
    %c0_20 = arith.constant 0 : index
    %c0_21 = arith.constant 0 : index
    %10 = vector.load %arg1[%c0_19, %c0_20, %c0_21] : memref<1x8x32xf32, #tpu.memory_space<vmem>>, vector<1x8x32xf32>
    %11 = vector.shape_cast %10 : vector<1x8x32xf32> to vector<8x32xf32>
    %c0_22 = arith.constant 0 : index
    %c0_23 = arith.constant 0 : index
    %c0_24 = arith.constant 0 : index
    %12 = vector.load %arg2[%c0_22, %c0_23, %c0_24] : memref<1x16x48xf32, #tpu.memory_space<vmem>>, vector<1x16x48xf32>
    %13 = vector.shape_cast %12 : vector<1x16x48xf32> to vector<16x48xf32>
    %cst = arith.constant dense<0.000000e+00> : vector<8xf32>
    %14 = vector.multi_reduction <add>, %11, %cst [1] : vector<8x32xf32> to vector<8xf32>
    %15 = vector.shape_cast %14 : vector<8xf32> to vector<8x1xf32>
    %cst_25 = arith.constant 3.200000e+01 : f32
    %16 = vector.broadcast %cst_25 : f32 to vector<8x1xf32>
    %17 = arith.divf %15, %16 : vector<8x1xf32>
    %18 = vector.broadcast %17 : vector<8x1xf32> to vector<8x32xf32>
    %19 = arith.subf %11, %18 : vector<8x32xf32>
    %20 = arith.mulf %19, %19 : vector<8x32xf32>
    %cst_26 = arith.constant dense<0.000000e+00> : vector<8xf32>
    %21 = vector.multi_reduction <add>, %20, %cst_26 [1] : vector<8x32xf32> to vector<8xf32>
    %22 = vector.shape_cast %21 : vector<8xf32> to vector<8x1xf32>
    %cst_27 = arith.constant 3.200000e+01 : f32
    %23 = vector.broadcast %cst_27 : f32 to vector<8x1xf32>
    %24 = arith.divf %22, %23 : vector<8x1xf32>
    %25 = vector.broadcast %17 : vector<8x1xf32> to vector<8x32xf32>
    %26 = arith.subf %11, %25 : vector<8x32xf32>
    %cst_28 = arith.constant 9.99999974E-6 : f32
    %27 = vector.broadcast %cst_28 : f32 to vector<8x1xf32>
    %28 = arith.addf %24, %27 : vector<8x1xf32>
    %29 = math.rsqrt %28 : vector<8x1xf32>
    %30 = vector.broadcast %29 : vector<8x1xf32> to vector<8x32xf32>
    %31 = arith.mulf %26, %30 : vector<8x32xf32>
    %32 = vector.broadcast %0 : vector<1x32xf32> to vector<8x32xf32>
    %33 = arith.mulf %31, %32 : vector<8x32xf32>
    %34 = vector.broadcast %1 : vector<1x32xf32> to vector<8x32xf32>
    %35 = arith.addf %33, %34 : vector<8x32xf32>
    %c0_29 = arith.constant 0 : index
    %c0_30 = arith.constant 0 : index
    %36 = vector.load %arg5[%c0_29, %c0_30] : memref<32x96xf32, #tpu.memory_space<vmem>>, vector<32x96xf32>
    %cst_31 = arith.constant dense<0.000000e+00> : vector<8x96xf32>
    %37 = tpu.matmul %35, %36, %cst_31 {dimension_numbers = #tpu.dot_dimension_numbers<[1], [0], [0], [1], [0, 0, 1, 1], [], []>} : vector<8x32xf32>, vector<32x96xf32>, vector<8x96xf32> -> vector<8x96xf32>
    %38 = vector.shape_cast %37 : vector<8x96xf32> to vector<1x8x96xf32>
    %39 = vector.extract_strided_slice %38 {offsets = [0, 0, 0], sizes = [1, 8, 8], strides = [1, 1, 1]} : vector<1x8x96xf32> to vector<1x8x8xf32>
    %40 = vector.extract_strided_slice %38 {offsets = [0, 0, 32], sizes = [1, 8, 8], strides = [1, 1, 1]} : vector<1x8x96xf32> to vector<1x8x8xf32>
    %41 = vector.extract_strided_slice %38 {offsets = [0, 0, 64], sizes = [1, 8, 8], strides = [1, 1, 1]} : vector<1x8x96xf32> to vector<1x8x8xf32>
    "tpu.trace_start"() <{level = 10 : i32, message = "bqd,bkd->bqk"}> : () -> ()
    %cst_32 = arith.constant dense<0.000000e+00> : vector<1x8x8xf32>
    %42 = tpu.matmul %39, %40, %cst_32 {dimension_numbers = #tpu.dot_dimension_numbers<[2], [2], [1], [1], [0, 0, 0, 1, 1, 1], [0], [0]>} : vector<1x8x8xf32>, vector<1x8x8xf32>, vector<1x8x8xf32> -> vector<1x8x8xf32>
    "tpu.trace_stop"() : () -> ()
    %cst_33 = arith.constant dense<0xFF800000> : vector<1x8xf32>
    %43 = vector.multi_reduction <maximumf>, %42, %cst_33 [2] : vector<1x8x8xf32> to vector<1x8xf32>
    %44 = vector.shape_cast %43 : vector<1x8xf32> to vector<1x8x1xf32>
    %45 = vector.broadcast %44 : vector<1x8x1xf32> to vector<1x8x8xf32>
    %46 = arith.subf %42, %45 : vector<1x8x8xf32>
    %47 = math.exp %46 : vector<1x8x8xf32>
    %cst_34 = arith.constant dense<0.000000e+00> : vector<1x8xf32>
    %48 = vector.multi_reduction <add>, %47, %cst_34 [2] : vector<1x8x8xf32> to vector<1x8xf32>
    %49 = vector.shape_cast %48 : vector<1x8xf32> to vector<1x8x1xf32>
    "tpu.trace_start"() <{level = 10 : i32, message = "bqk,bkd->bqd"}> : () -> ()
    %cst_35 = arith.constant dense<0.000000e+00> : vector<1x8x8xf32>
    %50 = tpu.matmul %47, %41, %cst_35 {dimension_numbers = #tpu.dot_dimension_numbers<[2], [1], [1], [2], [0, 0, 0, 1, 1, 2], [0], [0]>} : vector<1x8x8xf32>, vector<1x8x8xf32>, vector<1x8x8xf32> -> vector<1x8x8xf32>
    "tpu.trace_stop"() : () -> ()
    %51 = tpu.reciprocal %49 : vector<1x8x1xf32> -> vector<1x8x1xf32>
    %52 = vector.broadcast %51 : vector<1x8x1xf32> to vector<1x8x8xf32>
    %53 = arith.mulf %50, %52 : vector<1x8x8xf32>
    %54 = vector.shape_cast %53 : vector<1x8x8xf32> to vector<8x8xf32>
    %55 = vector.extract_strided_slice %38 {offsets = [0, 0, 8], sizes = [1, 8, 8], strides = [1, 1, 1]} : vector<1x8x96xf32> to vector<1x8x8xf32>
    %56 = vector.extract_strided_slice %38 {offsets = [0, 0, 40], sizes = [1, 8, 8], strides = [1, 1, 1]} : vector<1x8x96xf32> to vector<1x8x8xf32>
    %57 = vector.extract_strided_slice %38 {offsets = [0, 0, 72], sizes = [1, 8, 8], strides = [1, 1, 1]} : vector<1x8x96xf32> to vector<1x8x8xf32>
    "tpu.trace_start"() <{level = 10 : i32, message = "bqd,bkd->bqk"}> : () -> ()
    %cst_36 = arith.constant dense<0.000000e+00> : vector<1x8x8xf32>
    %58 = tpu.matmul %55, %56, %cst_36 {dimension_numbers = #tpu.dot_dimension_numbers<[2], [2], [1], [1], [0, 0, 0, 1, 1, 1], [0], [0]>} : vector<1x8x8xf32>, vector<1x8x8xf32>, vector<1x8x8xf32> -> vector<1x8x8xf32>
    "tpu.trace_stop"() : () -> ()
    %cst_37 = arith.constant dense<0xFF800000> : vector<1x8xf32>
    %59 = vector.multi_reduction <maximumf>, %58, %cst_37 [2] : vector<1x8x8xf32> to vector<1x8xf32>
    %60 = vector.shape_cast %59 : vector<1x8xf32> to vector<1x8x1xf32>
    %61 = vector.broadcast %60 : vector<1x8x1xf32> to vector<1x8x8xf32>
    %62 = arith.subf %58, %61 : vector<1x8x8xf32>
    %63 = math.exp %62 : vector<1x8x8xf32>
    %cst_38 = arith.constant dense<0.000000e+00> : vector<1x8xf32>
    %64 = vector.multi_reduction <add>, %63, %cst_38 [2] : vector<1x8x8xf32> to vector<1x8xf32>
    %65 = vector.shape_cast %64 : vector<1x8xf32> to vector<1x8x1xf32>
    "tpu.trace_start"() <{level = 10 : i32, message = "bqk,bkd->bqd"}> : () -> ()
    %cst_39 = arith.constant dense<0.000000e+00> : vector<1x8x8xf32>
    %66 = tpu.matmul %63, %57, %cst_39 {dimension_numbers = #tpu.dot_dimension_numbers<[2], [1], [1], [2], [0, 0, 0, 1, 1, 2], [0], [0]>} : vector<1x8x8xf32>, vector<1x8x8xf32>, vector<1x8x8xf32> -> vector<1x8x8xf32>
    "tpu.trace_stop"() : () -> ()
    %67 = tpu.reciprocal %65 : vector<1x8x1xf32> -> vector<1x8x1xf32>
    %68 = vector.broadcast %67 : vector<1x8x1xf32> to vector<1x8x8xf32>
    %69 = arith.mulf %66, %68 : vector<1x8x8xf32>
    %70 = vector.shape_cast %69 : vector<1x8x8xf32> to vector<8x8xf32>
    %71 = vector.extract_strided_slice %38 {offsets = [0, 0, 16], sizes = [1, 8, 8], strides = [1, 1, 1]} : vector<1x8x96xf32> to vector<1x8x8xf32>
    %72 = vector.extract_strided_slice %38 {offsets = [0, 0, 48], sizes = [1, 8, 8], strides = [1, 1, 1]} : vector<1x8x96xf32> to vector<1x8x8xf32>
    %73 = vector.extract_strided_slice %38 {offsets = [0, 0, 80], sizes = [1, 8, 8], strides = [1, 1, 1]} : vector<1x8x96xf32> to vector<1x8x8xf32>
    "tpu.trace_start"() <{level = 10 : i32, message = "bqd,bkd->bqk"}> : () -> ()
    %cst_40 = arith.constant dense<0.000000e+00> : vector<1x8x8xf32>
    %74 = tpu.matmul %71, %72, %cst_40 {dimension_numbers = #tpu.dot_dimension_numbers<[2], [2], [1], [1], [0, 0, 0, 1, 1, 1], [0], [0]>} : vector<1x8x8xf32>, vector<1x8x8xf32>, vector<1x8x8xf32> -> vector<1x8x8xf32>
    "tpu.trace_stop"() : () -> ()
    %cst_41 = arith.constant dense<0xFF800000> : vector<1x8xf32>
    %75 = vector.multi_reduction <maximumf>, %74, %cst_41 [2] : vector<1x8x8xf32> to vector<1x8xf32>
    %76 = vector.shape_cast %75 : vector<1x8xf32> to vector<1x8x1xf32>
    %77 = vector.broadcast %76 : vector<1x8x1xf32> to vector<1x8x8xf32>
    %78 = arith.subf %74, %77 : vector<1x8x8xf32>
    %79 = math.exp %78 : vector<1x8x8xf32>
    %cst_42 = arith.constant dense<0.000000e+00> : vector<1x8xf32>
    %80 = vector.multi_reduction <add>, %79, %cst_42 [2] : vector<1x8x8xf32> to vector<1x8xf32>
    %81 = vector.shape_cast %80 : vector<1x8xf32> to vector<1x8x1xf32>
    "tpu.trace_start"() <{level = 10 : i32, message = "bqk,bkd->bqd"}> : () -> ()
    %cst_43 = arith.constant dense<0.000000e+00> : vector<1x8x8xf32>
    %82 = tpu.matmul %79, %73, %cst_43 {dimension_numbers = #tpu.dot_dimension_numbers<[2], [1], [1], [2], [0, 0, 0, 1, 1, 2], [0], [0]>} : vector<1x8x8xf32>, vector<1x8x8xf32>, vector<1x8x8xf32> -> vector<1x8x8xf32>
    "tpu.trace_stop"() : () -> ()
    %83 = tpu.reciprocal %81 : vector<1x8x1xf32> -> vector<1x8x1xf32>
    %84 = vector.broadcast %83 : vector<1x8x1xf32> to vector<1x8x8xf32>
    %85 = arith.mulf %82, %84 : vector<1x8x8xf32>
    %86 = vector.shape_cast %85 : vector<1x8x8xf32> to vector<8x8xf32>
    %87 = vector.extract_strided_slice %38 {offsets = [0, 0, 24], sizes = [1, 8, 8], strides = [1, 1, 1]} : vector<1x8x96xf32> to vector<1x8x8xf32>
    %88 = vector.extract_strided_slice %38 {offsets = [0, 0, 56], sizes = [1, 8, 8], strides = [1, 1, 1]} : vector<1x8x96xf32> to vector<1x8x8xf32>
    %89 = vector.extract_strided_slice %38 {offsets = [0, 0, 88], sizes = [1, 8, 8], strides = [1, 1, 1]} : vector<1x8x96xf32> to vector<1x8x8xf32>
    "tpu.trace_start"() <{level = 10 : i32, message = "bqd,bkd->bqk"}> : () -> ()
    %cst_44 = arith.constant dense<0.000000e+00> : vector<1x8x8xf32>
    %90 = tpu.matmul %87, %88, %cst_44 {dimension_numbers = #tpu.dot_dimension_numbers<[2], [2], [1], [1], [0, 0, 0, 1, 1, 1], [0], [0]>} : vector<1x8x8xf32>, vector<1x8x8xf32>, vector<1x8x8xf32> -> vector<1x8x8xf32>
    "tpu.trace_stop"() : () -> ()
    %cst_45 = arith.constant dense<0xFF800000> : vector<1x8xf32>
    %91 = vector.multi_reduction <maximumf>, %90, %cst_45 [2] : vector<1x8x8xf32> to vector<1x8xf32>
    %92 = vector.shape_cast %91 : vector<1x8xf32> to vector<1x8x1xf32>
    %93 = vector.broadcast %92 : vector<1x8x1xf32> to vector<1x8x8xf32>
    %94 = arith.subf %90, %93 : vector<1x8x8xf32>
    %95 = math.exp %94 : vector<1x8x8xf32>
    %cst_46 = arith.constant dense<0.000000e+00> : vector<1x8xf32>
    %96 = vector.multi_reduction <add>, %95, %cst_46 [2] : vector<1x8x8xf32> to vector<1x8xf32>
    %97 = vector.shape_cast %96 : vector<1x8xf32> to vector<1x8x1xf32>
    "tpu.trace_start"() <{level = 10 : i32, message = "bqk,bkd->bqd"}> : () -> ()
    %cst_47 = arith.constant dense<0.000000e+00> : vector<1x8x8xf32>
    %98 = tpu.matmul %95, %89, %cst_47 {dimension_numbers = #tpu.dot_dimension_numbers<[2], [1], [1], [2], [0, 0, 0, 1, 1, 2], [0], [0]>} : vector<1x8x8xf32>, vector<1x8x8xf32>, vector<1x8x8xf32> -> vector<1x8x8xf32>
    "tpu.trace_stop"() : () -> ()
    %99 = tpu.reciprocal %97 : vector<1x8x1xf32> -> vector<1x8x1xf32>
    %100 = vector.broadcast %99 : vector<1x8x1xf32> to vector<1x8x8xf32>
    %101 = arith.mulf %98, %100 : vector<1x8x8xf32>
    %102 = vector.shape_cast %101 : vector<1x8x8xf32> to vector<8x8xf32>
    %103 = tpu.concatenate %54, %70, %86, %102 in 1 : vector<8x8xf32>, vector<8x8xf32>, vector<8x8xf32>, vector<8x8xf32> -> vector<8x32xf32>
    %c0_48 = arith.constant 0 : index
    %c0_49 = arith.constant 0 : index
    %104 = vector.load %arg6[%c0_48, %c0_49] : memref<32x32xf32, #tpu.memory_space<vmem>>, vector<32x32xf32>
    %cst_50 = arith.constant dense<0.000000e+00> : vector<8x32xf32>
    %105 = tpu.matmul %103, %104, %cst_50 {dimension_numbers = #tpu.dot_dimension_numbers<[1], [0], [0], [1], [0, 0, 1, 1], [], []>} : vector<8x32xf32>, vector<32x32xf32>, vector<8x32xf32> -> vector<8x32xf32>
    %106 = vector.broadcast %6 : vector<1x32xf32> to vector<8x32xf32>
    %107 = arith.addf %105, %106 : vector<8x32xf32>
    %108 = arith.addf %11, %107 : vector<8x32xf32>
    %cst_51 = arith.constant dense<0.000000e+00> : vector<8xf32>
    %109 = vector.multi_reduction <add>, %108, %cst_51 [1] : vector<8x32xf32> to vector<8xf32>
    %110 = vector.shape_cast %109 : vector<8xf32> to vector<8x1xf32>
    %cst_52 = arith.constant 3.200000e+01 : f32
    %111 = vector.broadcast %cst_52 : f32 to vector<8x1xf32>
    %112 = arith.divf %110, %111 : vector<8x1xf32>
    %113 = vector.broadcast %112 : vector<8x1xf32> to vector<8x32xf32>
    %114 = arith.subf %108, %113 : vector<8x32xf32>
    %115 = arith.mulf %114, %114 : vector<8x32xf32>
    %cst_53 = arith.constant dense<0.000000e+00> : vector<8xf32>
    %116 = vector.multi_reduction <add>, %115, %cst_53 [1] : vector<8x32xf32> to vector<8xf32>
    %117 = vector.shape_cast %116 : vector<8xf32> to vector<8x1xf32>
    %cst_54 = arith.constant 3.200000e+01 : f32
    %118 = vector.broadcast %cst_54 : f32 to vector<8x1xf32>
    %119 = arith.divf %117, %118 : vector<8x1xf32>
    %120 = vector.broadcast %112 : vector<8x1xf32> to vector<8x32xf32>
    %121 = arith.subf %108, %120 : vector<8x32xf32>
    %cst_55 = arith.constant 9.99999974E-6 : f32
    %122 = vector.broadcast %cst_55 : f32 to vector<8x1xf32>
    %123 = arith.addf %119, %122 : vector<8x1xf32>
    %124 = math.rsqrt %123 : vector<8x1xf32>
    %125 = vector.broadcast %124 : vector<8x1xf32> to vector<8x32xf32>
    %126 = arith.mulf %121, %125 : vector<8x32xf32>
    %127 = vector.broadcast %2 : vector<1x32xf32> to vector<8x32xf32>
    %128 = arith.mulf %126, %127 : vector<8x32xf32>
    %129 = vector.broadcast %3 : vector<1x32xf32> to vector<8x32xf32>
    %130 = arith.addf %128, %129 : vector<8x32xf32>
    %c0_56 = arith.constant 0 : index
    %c0_57 = arith.constant 0 : index
    %131 = vector.load %arg10[%c0_56, %c0_57] : memref<32x32xf32, #tpu.memory_space<vmem>>, vector<32x32xf32>
    %cst_58 = arith.constant dense<0.000000e+00> : vector<8x32xf32>
    %132 = tpu.matmul %130, %131, %cst_58 {dimension_numbers = #tpu.dot_dimension_numbers<[1], [0], [0], [1], [0, 0, 1, 1], [], []>} : vector<8x32xf32>, vector<32x32xf32>, vector<8x32xf32> -> vector<8x32xf32>
    %133 = vector.shape_cast %132 : vector<8x32xf32> to vector<1x8x32xf32>
    %c0_59 = arith.constant 0 : index
    %c0_60 = arith.constant 0 : index
    %134 = vector.load %arg11[%c0_59, %c0_60] : memref<48x64xf32, #tpu.memory_space<vmem>>, vector<48x64xf32>
    %cst_61 = arith.constant dense<0.000000e+00> : vector<16x64xf32>
    %135 = tpu.matmul %13, %134, %cst_61 {dimension_numbers = #tpu.dot_dimension_numbers<[1], [0], [0], [1], [0, 0, 1, 1], [], []>} : vector<16x48xf32>, vector<48x64xf32>, vector<16x64xf32> -> vector<16x64xf32>
    %136 = vector.shape_cast %135 : vector<16x64xf32> to vector<1x16x64xf32>
    %137 = vector.extract_strided_slice %133 {offsets = [0, 0, 0], sizes = [1, 8, 8], strides = [1, 1, 1]} : vector<1x8x32xf32> to vector<1x8x8xf32>
    %138 = vector.extract_strided_slice %136 {offsets = [0, 0, 0], sizes = [1, 16, 8], strides = [1, 1, 1]} : vector<1x16x64xf32> to vector<1x16x8xf32>
    %139 = vector.extract_strided_slice %136 {offsets = [0, 0, 32], sizes = [1, 16, 8], strides = [1, 1, 1]} : vector<1x16x64xf32> to vector<1x16x8xf32>
    "tpu.trace_start"() <{level = 10 : i32, message = "bqd,bkd->bqk"}> : () -> ()
    %cst_62 = arith.constant dense<0.000000e+00> : vector<1x8x16xf32>
    %140 = tpu.matmul %137, %138, %cst_62 {dimension_numbers = #tpu.dot_dimension_numbers<[2], [2], [1], [1], [0, 0, 0, 1, 1, 1], [0], [0]>} : vector<1x8x8xf32>, vector<1x16x8xf32>, vector<1x8x16xf32> -> vector<1x8x16xf32>
    "tpu.trace_stop"() : () -> ()
    %cst_63 = arith.constant dense<0xFF800000> : vector<1x8xf32>
    %141 = vector.multi_reduction <maximumf>, %140, %cst_63 [2] : vector<1x8x16xf32> to vector<1x8xf32>
    %142 = vector.shape_cast %141 : vector<1x8xf32> to vector<1x8x1xf32>
    %143 = vector.broadcast %142 : vector<1x8x1xf32> to vector<1x8x16xf32>
    %144 = arith.subf %140, %143 : vector<1x8x16xf32>
    %145 = math.exp %144 : vector<1x8x16xf32>
    %cst_64 = arith.constant dense<0.000000e+00> : vector<1x8xf32>
    %146 = vector.multi_reduction <add>, %145, %cst_64 [2] : vector<1x8x16xf32> to vector<1x8xf32>
    %147 = vector.shape_cast %146 : vector<1x8xf32> to vector<1x8x1xf32>
    "tpu.trace_start"() <{level = 10 : i32, message = "bqk,bkd->bqd"}> : () -> ()
    %cst_65 = arith.constant dense<0.000000e+00> : vector<1x8x8xf32>
    %148 = tpu.matmul %145, %139, %cst_65 {dimension_numbers = #tpu.dot_dimension_numbers<[2], [1], [1], [2], [0, 0, 0, 1, 1, 2], [0], [0]>} : vector<1x8x16xf32>, vector<1x16x8xf32>, vector<1x8x8xf32> -> vector<1x8x8xf32>
    "tpu.trace_stop"() : () -> ()
    %149 = tpu.reciprocal %147 : vector<1x8x1xf32> -> vector<1x8x1xf32>
    %150 = vector.broadcast %149 : vector<1x8x1xf32> to vector<1x8x8xf32>
    %151 = arith.mulf %148, %150 : vector<1x8x8xf32>
    %152 = vector.shape_cast %151 : vector<1x8x8xf32> to vector<8x8xf32>
    %153 = vector.extract_strided_slice %133 {offsets = [0, 0, 8], sizes = [1, 8, 8], strides = [1, 1, 1]} : vector<1x8x32xf32> to vector<1x8x8xf32>
    %154 = vector.extract_strided_slice %136 {offsets = [0, 0, 8], sizes = [1, 16, 8], strides = [1, 1, 1]} : vector<1x16x64xf32> to vector<1x16x8xf32>
    %155 = vector.extract_strided_slice %136 {offsets = [0, 0, 40], sizes = [1, 16, 8], strides = [1, 1, 1]} : vector<1x16x64xf32> to vector<1x16x8xf32>
    "tpu.trace_start"() <{level = 10 : i32, message = "bqd,bkd->bqk"}> : () -> ()
    %cst_66 = arith.constant dense<0.000000e+00> : vector<1x8x16xf32>
    %156 = tpu.matmul %153, %154, %cst_66 {dimension_numbers = #tpu.dot_dimension_numbers<[2], [2], [1], [1], [0, 0, 0, 1, 1, 1], [0], [0]>} : vector<1x8x8xf32>, vector<1x16x8xf32>, vector<1x8x16xf32> -> vector<1x8x16xf32>
    "tpu.trace_stop"() : () -> ()
    %cst_67 = arith.constant dense<0xFF800000> : vector<1x8xf32>
    %157 = vector.multi_reduction <maximumf>, %156, %cst_67 [2] : vector<1x8x16xf32> to vector<1x8xf32>
    %158 = vector.shape_cast %157 : vector<1x8xf32> to vector<1x8x1xf32>
    %159 = vector.broadcast %158 : vector<1x8x1xf32> to vector<1x8x16xf32>
    %160 = arith.subf %156, %159 : vector<1x8x16xf32>
    %161 = math.exp %160 : vector<1x8x16xf32>
    %cst_68 = arith.constant dense<0.000000e+00> : vector<1x8xf32>
    %162 = vector.multi_reduction <add>, %161, %cst_68 [2] : vector<1x8x16xf32> to vector<1x8xf32>
    %163 = vector.shape_cast %162 : vector<1x8xf32> to vector<1x8x1xf32>
    "tpu.trace_start"() <{level = 10 : i32, message = "bqk,bkd->bqd"}> : () -> ()
    %cst_69 = arith.constant dense<0.000000e+00> : vector<1x8x8xf32>
    %164 = tpu.matmul %161, %155, %cst_69 {dimension_numbers = #tpu.dot_dimension_numbers<[2], [1], [1], [2], [0, 0, 0, 1, 1, 2], [0], [0]>} : vector<1x8x16xf32>, vector<1x16x8xf32>, vector<1x8x8xf32> -> vector<1x8x8xf32>
    "tpu.trace_stop"() : () -> ()
    %165 = tpu.reciprocal %163 : vector<1x8x1xf32> -> vector<1x8x1xf32>
    %166 = vector.broadcast %165 : vector<1x8x1xf32> to vector<1x8x8xf32>
    %167 = arith.mulf %164, %166 : vector<1x8x8xf32>
    %168 = vector.shape_cast %167 : vector<1x8x8xf32> to vector<8x8xf32>
    %169 = vector.extract_strided_slice %133 {offsets = [0, 0, 16], sizes = [1, 8, 8], strides = [1, 1, 1]} : vector<1x8x32xf32> to vector<1x8x8xf32>
    %170 = vector.extract_strided_slice %136 {offsets = [0, 0, 16], sizes = [1, 16, 8], strides = [1, 1, 1]} : vector<1x16x64xf32> to vector<1x16x8xf32>
    %171 = vector.extract_strided_slice %136 {offsets = [0, 0, 48], sizes = [1, 16, 8], strides = [1, 1, 1]} : vector<1x16x64xf32> to vector<1x16x8xf32>
    "tpu.trace_start"() <{level = 10 : i32, message = "bqd,bkd->bqk"}> : () -> ()
    %cst_70 = arith.constant dense<0.000000e+00> : vector<1x8x16xf32>
    %172 = tpu.matmul %169, %170, %cst_70 {dimension_numbers = #tpu.dot_dimension_numbers<[2], [2], [1], [1], [0, 0, 0, 1, 1, 1], [0], [0]>} : vector<1x8x8xf32>, vector<1x16x8xf32>, vector<1x8x16xf32> -> vector<1x8x16xf32>
    "tpu.trace_stop"() : () -> ()
    %cst_71 = arith.constant dense<0xFF800000> : vector<1x8xf32>
    %173 = vector.multi_reduction <maximumf>, %172, %cst_71 [2] : vector<1x8x16xf32> to vector<1x8xf32>
    %174 = vector.shape_cast %173 : vector<1x8xf32> to vector<1x8x1xf32>
    %175 = vector.broadcast %174 : vector<1x8x1xf32> to vector<1x8x16xf32>
    %176 = arith.subf %172, %175 : vector<1x8x16xf32>
    %177 = math.exp %176 : vector<1x8x16xf32>
    %cst_72 = arith.constant dense<0.000000e+00> : vector<1x8xf32>
    %178 = vector.multi_reduction <add>, %177, %cst_72 [2] : vector<1x8x16xf32> to vector<1x8xf32>
    %179 = vector.shape_cast %178 : vector<1x8xf32> to vector<1x8x1xf32>
    "tpu.trace_start"() <{level = 10 : i32, message = "bqk,bkd->bqd"}> : () -> ()
    %cst_73 = arith.constant dense<0.000000e+00> : vector<1x8x8xf32>
    %180 = tpu.matmul %177, %171, %cst_73 {dimension_numbers = #tpu.dot_dimension_numbers<[2], [1], [1], [2], [0, 0, 0, 1, 1, 2], [0], [0]>} : vector<1x8x16xf32>, vector<1x16x8xf32>, vector<1x8x8xf32> -> vector<1x8x8xf32>
    "tpu.trace_stop"() : () -> ()
    %181 = tpu.reciprocal %179 : vector<1x8x1xf32> -> vector<1x8x1xf32>
    %182 = vector.broadcast %181 : vector<1x8x1xf32> to vector<1x8x8xf32>
    %183 = arith.mulf %180, %182 : vector<1x8x8xf32>
    %184 = vector.shape_cast %183 : vector<1x8x8xf32> to vector<8x8xf32>
    %185 = vector.extract_strided_slice %133 {offsets = [0, 0, 24], sizes = [1, 8, 8], strides = [1, 1, 1]} : vector<1x8x32xf32> to vector<1x8x8xf32>
    %186 = vector.extract_strided_slice %136 {offsets = [0, 0, 24], sizes = [1, 16, 8], strides = [1, 1, 1]} : vector<1x16x64xf32> to vector<1x16x8xf32>
    %187 = vector.extract_strided_slice %136 {offsets = [0, 0, 56], sizes = [1, 16, 8], strides = [1, 1, 1]} : vector<1x16x64xf32> to vector<1x16x8xf32>
    "tpu.trace_start"() <{level = 10 : i32, message = "bqd,bkd->bqk"}> : () -> ()
    %cst_74 = arith.constant dense<0.000000e+00> : vector<1x8x16xf32>
    %188 = tpu.matmul %185, %186, %cst_74 {dimension_numbers = #tpu.dot_dimension_numbers<[2], [2], [1], [1], [0, 0, 0, 1, 1, 1], [0], [0]>} : vector<1x8x8xf32>, vector<1x16x8xf32>, vector<1x8x16xf32> -> vector<1x8x16xf32>
    "tpu.trace_stop"() : () -> ()
    %cst_75 = arith.constant dense<0xFF800000> : vector<1x8xf32>
    %189 = vector.multi_reduction <maximumf>, %188, %cst_75 [2] : vector<1x8x16xf32> to vector<1x8xf32>
    %190 = vector.shape_cast %189 : vector<1x8xf32> to vector<1x8x1xf32>
    %191 = vector.broadcast %190 : vector<1x8x1xf32> to vector<1x8x16xf32>
    %192 = arith.subf %188, %191 : vector<1x8x16xf32>
    %193 = math.exp %192 : vector<1x8x16xf32>
    %cst_76 = arith.constant dense<0.000000e+00> : vector<1x8xf32>
    %194 = vector.multi_reduction <add>, %193, %cst_76 [2] : vector<1x8x16xf32> to vector<1x8xf32>
    %195 = vector.shape_cast %194 : vector<1x8xf32> to vector<1x8x1xf32>
    "tpu.trace_start"() <{level = 10 : i32, message = "bqk,bkd->bqd"}> : () -> ()
    %cst_77 = arith.constant dense<0.000000e+00> : vector<1x8x8xf32>
    %196 = tpu.matmul %193, %187, %cst_77 {dimension_numbers = #tpu.dot_dimension_numbers<[2], [1], [1], [2], [0, 0, 0, 1, 1, 2], [0], [0]>} : vector<1x8x16xf32>, vector<1x16x8xf32>, vector<1x8x8xf32> -> vector<1x8x8xf32>
    "tpu.trace_stop"() : () -> ()
    %197 = tpu.reciprocal %195 : vector<1x8x1xf32> -> vector<1x8x1xf32>
    %198 = vector.broadcast %197 : vector<1x8x1xf32> to vector<1x8x8xf32>
    %199 = arith.mulf %196, %198 : vector<1x8x8xf32>
    %200 = vector.shape_cast %199 : vector<1x8x8xf32> to vector<8x8xf32>
    %201 = tpu.concatenate %152, %168, %184, %200 in 1 : vector<8x8xf32>, vector<8x8xf32>, vector<8x8xf32>, vector<8x8xf32> -> vector<8x32xf32>
    %c0_78 = arith.constant 0 : index
    %c0_79 = arith.constant 0 : index
    %202 = vector.load %arg12[%c0_78, %c0_79] : memref<32x32xf32, #tpu.memory_space<vmem>>, vector<32x32xf32>
    %cst_80 = arith.constant dense<0.000000e+00> : vector<8x32xf32>
    %203 = tpu.matmul %201, %202, %cst_80 {dimension_numbers = #tpu.dot_dimension_numbers<[1], [0], [0], [1], [0, 0, 1, 1], [], []>} : vector<8x32xf32>, vector<32x32xf32>, vector<8x32xf32> -> vector<8x32xf32>
    %204 = vector.broadcast %7 : vector<1x32xf32> to vector<8x32xf32>
    %205 = arith.addf %203, %204 : vector<8x32xf32>
    %206 = arith.addf %108, %205 : vector<8x32xf32>
    %cst_81 = arith.constant dense<0.000000e+00> : vector<8xf32>
    %207 = vector.multi_reduction <add>, %206, %cst_81 [1] : vector<8x32xf32> to vector<8xf32>
    %208 = vector.shape_cast %207 : vector<8xf32> to vector<8x1xf32>
    %cst_82 = arith.constant 3.200000e+01 : f32
    %209 = vector.broadcast %cst_82 : f32 to vector<8x1xf32>
    %210 = arith.divf %208, %209 : vector<8x1xf32>
    %211 = vector.broadcast %210 : vector<8x1xf32> to vector<8x32xf32>
    %212 = arith.subf %206, %211 : vector<8x32xf32>
    %213 = arith.mulf %212, %212 : vector<8x32xf32>
    %cst_83 = arith.constant dense<0.000000e+00> : vector<8xf32>
    %214 = vector.multi_reduction <add>, %213, %cst_83 [1] : vector<8x32xf32> to vector<8xf32>
    %215 = vector.shape_cast %214 : vector<8xf32> to vector<8x1xf32>
    %cst_84 = arith.constant 3.200000e+01 : f32
    %216 = vector.broadcast %cst_84 : f32 to vector<8x1xf32>
    %217 = arith.divf %215, %216 : vector<8x1xf32>
    %218 = vector.broadcast %210 : vector<8x1xf32> to vector<8x32xf32>
    %219 = arith.subf %206, %218 : vector<8x32xf32>
    %cst_85 = arith.constant 9.99999974E-6 : f32
    %220 = vector.broadcast %cst_85 : f32 to vector<8x1xf32>
    %221 = arith.addf %217, %220 : vector<8x1xf32>
    %222 = math.rsqrt %221 : vector<8x1xf32>
    %223 = vector.broadcast %222 : vector<8x1xf32> to vector<8x32xf32>
    %224 = arith.mulf %219, %223 : vector<8x32xf32>
    %225 = vector.broadcast %4 : vector<1x32xf32> to vector<8x32xf32>
    %226 = arith.mulf %224, %225 : vector<8x32xf32>
    %227 = vector.broadcast %5 : vector<1x32xf32> to vector<8x32xf32>
    %228 = arith.addf %226, %227 : vector<8x32xf32>
    %c0_86 = arith.constant 0 : index
    %c0_87 = arith.constant 0 : index
    %229 = vector.load %arg16[%c0_86, %c0_87] : memref<32x128xf32, #tpu.memory_space<vmem>>, vector<32x128xf32>
    %cst_88 = arith.constant dense<0.000000e+00> : vector<8x128xf32>
    %230 = tpu.matmul %228, %229, %cst_88 {dimension_numbers = #tpu.dot_dimension_numbers<[1], [0], [0], [1], [0, 0, 1, 1], [], []>} : vector<8x32xf32>, vector<32x128xf32>, vector<8x128xf32> -> vector<8x128xf32>
    %231 = vector.broadcast %8 : vector<1x128xf32> to vector<8x128xf32>
    %232 = arith.addf %230, %231 : vector<8x128xf32>
    %cst_89 = arith.constant 5.000000e-01 : f32
    %233 = vector.broadcast %cst_89 : f32 to vector<8x128xf32>
    %234 = arith.mulf %233, %232 : vector<8x128xf32>
    %cst_90 = arith.constant 4.471500e-02 : f32
    %235 = vector.broadcast %cst_90 : f32 to vector<8x128xf32>
    %236 = arith.mulf %235, %232 : vector<8x128xf32>
    %237 = arith.mulf %236, %232 : vector<8x128xf32>
    %238 = arith.mulf %237, %232 : vector<8x128xf32>
    %239 = arith.addf %232, %238 : vector<8x128xf32>
    %cst_91 = arith.constant 0.797884583 : f32
    %240 = vector.broadcast %cst_91 : f32 to vector<8x128xf32>
    %241 = arith.mulf %240, %239 : vector<8x128xf32>
    %242 = math.tanh %241 : vector<8x128xf32>
    %cst_92 = arith.constant 1.000000e+00 : f32
    %243 = vector.broadcast %cst_92 : f32 to vector<8x128xf32>
    %244 = arith.addf %243, %242 : vector<8x128xf32>
    %245 = arith.mulf %234, %244 : vector<8x128xf32>
    %c0_93 = arith.constant 0 : index
    %c0_94 = arith.constant 0 : index
    %246 = vector.load %arg18[%c0_93, %c0_94] : memref<128x32xf32, #tpu.memory_space<vmem>>, vector<128x32xf32>
    %cst_95 = arith.constant dense<0.000000e+00> : vector<8x32xf32>
    %247 = tpu.matmul %245, %246, %cst_95 {dimension_numbers = #tpu.dot_dimension_numbers<[1], [0], [0], [1], [0, 0, 1, 1], [], []>} : vector<8x128xf32>, vector<128x32xf32>, vector<8x32xf32> -> vector<8x32xf32>
    %248 = vector.broadcast %9 : vector<1x32xf32> to vector<8x32xf32>
    %249 = arith.addf %247, %248 : vector<8x32xf32>
    %250 = arith.addf %206, %249 : vector<8x32xf32>
    %251 = vector.shape_cast %250 : vector<8x32xf32> to vector<1x8x32xf32>
    %c0_96 = arith.constant 0 : index
    %c0_97 = arith.constant 0 : index
    %c0_98 = arith.constant 0 : index
    %252 = vector.load %arg20[%c0_96, %c0_97, %c0_98] : memref<1x8x32xf32, #tpu.memory_space<vmem>>, vector<1x8x32xf32>
    tpu.vector_store %arg20[%c0_96, %c0_97, %c0_98], %251 {strides = array<i32>} : memref<1x8x32xf32, #tpu.memory_space<vmem>>, vector<1x8x32xf32>,
    return
  }
  func.func @transform_0(%arg0: i32) -> (i32, i32, i32) {
    %c0_i32 = arith.constant 0 : i32
    %c0_i32_0 = arith.constant 0 : i32
    %c0_i32_1 = arith.constant 0 : i32
    return %arg0, %c0_i32, %c0_i32_0 : i32, i32, i32
  }
  func.func @transform_1(%arg0: i32) -> (i32, i32, i32) {
    %c0_i32 = arith.constant 0 : i32
    %c0_i32_0 = arith.constant 0 : i32
    %c0_i32_1 = arith.constant 0 : i32
    return %arg0, %c0_i32, %c0_i32_0 : i32, i32, i32
  }
  func.func @transform_2(%arg0: i32) -> (i32, i32) {
    %c0_i32 = arith.constant 0 : i32
    %c0_i32_0 = arith.constant 0 : i32
    %c0_i32_1 = arith.constant 0 : i32
    return %c0_i32, %c0_i32_0 : i32, i32
  }
  func.func @transform_3(%arg0: i32) -> (i32, i32) {
    %c0_i32 = arith.constant 0 : i32
    %c0_i32_0 = arith.constant 0 : i32
    %c0_i32_1 = arith.constant 0 : i32
    return %c0_i32, %c0_i32_0 : i32, i32
  }
  func.func @transform_4(%arg0: i32) -> (i32, i32) {
    %c0_i32 = arith.constant 0 : i32
    %c0_i32_0 = arith.constant 0 : i32
    %c0_i32_1 = arith.constant 0 : i32
    return %c0_i32, %c0_i32_0 : i32, i32
  }
  func.func @transform_5(%arg0: i32) -> (i32, i32) {
    %c0_i32 = arith.constant 0 : i32
    %c0_i32_0 = arith.constant 0 : i32
    %c0_i32_1 = arith.constant 0 : i32
    return %c0_i32, %c0_i32_0 : i32, i32
  }
  func.func @transform_6(%arg0: i32) -> (i32, i32) {
    %c0_i32 = arith.constant 0 : i32
    %c0_i32_0 = arith.constant 0 : i32
    %c0_i32_1 = arith.constant 0 : i32
    return %c0_i32, %c0_i32_0 : i32, i32
  }
  func.func @transform_7(%arg0: i32) -> (i32, i32) {
    %c0_i32 = arith.constant 0 : i32
    %c0_i32_0 = arith.constant 0 : i32
    %c0_i32_1 = arith.constant 0 : i32
    return %c0_i32, %c0_i32_0 : i32, i32
  }
  func.func @transform_8(%arg0: i32) -> (i32, i32) {
    %c0_i32 = arith.constant 0 : i32
    %c0_i32_0 = arith.constant 0 : i32
    %c0_i32_1 = arith.constant 0 : i32
    return %c0_i32, %c0_i32_0 : i32, i32
  }
  func.func @transform_9(%arg0: i32) -> (i32, i32) {
    %c0_i32 = arith.constant 0 : i32
    %c0_i32_0 = arith.constant 0 : i32
    %c0_i32_1 = arith.constant 0 : i32
    return %c0_i32, %c0_i32_0 : i32, i32
  }
  func.func @transform_10(%arg0: i32) -> (i32, i32) {
    %c0_i32 = arith.constant 0 : i32
    %c0_i32_0 = arith.constant 0 : i32
    %c0_i32_1 = arith.constant 0 : i32
    return %c0_i32, %c0_i32_0 : i32, i32
  }
  func.func @transform_11(%arg0: i32) -> (i32, i32) {
    %c0_i32 = arith.constant 0 : i32
    %c0_i32_0 = arith.constant 0 : i32
    %c0_i32_1 = arith.constant 0 : i32
    return %c0_i32, %c0_i32_0 : i32, i32
  }
  func.func @transform_12(%arg0: i32) -> (i32, i32) {
    %c0_i32 = arith.constant 0 : i32
    %c0_i32_0 = arith.constant 0 : i32
    %c0_i32_1 = arith.constant 0 : i32
    return %c0_i32, %c0_i32_0 : i32, i32
  }
  func.func @transform_13(%arg0: i32) -> (i32, i32) {
    %c0_i32 = arith.constant 0 : i32
    %c0_i32_0 = arith.constant 0 : i32
    %c0_i32_1 = arith.constant 0 : i32
    return %c0_i32, %c0_i32_0 : i32, i32
  }
  func.func @transform_14(%arg0: i32) -> (i32, i32) {
    %c0_i32 = arith.constant 0 : i32
    %c0_i32_0 = arith.constant 0 : i32
    %c0_i32_1 = arith.constant 0 : i32
    return %c0_i32, %c0_i32_0 : i32, i32
  }
  func.func @transform_15(%arg0: i32) -> (i32, i32) {
    %c0_i32 = arith.constant 0 : i32
    %c0_i32_0 = arith.constant 0 : i32
    %c0_i32_1 = arith.constant 0 : i32
    return %c0_i32, %c0_i32_0 : i32, i32
  }
  func.func @transform_16(%arg0: i32) -> (i32, i32) {
    %c0_i32 = arith.constant 0 : i32
    %c0_i32_0 = arith.constant 0 : i32
    %c0_i32_1 = arith.constant 0 : i32
    return %c0_i32, %c0_i32_0 : i32, i32
  }
  func.func @transform_17(%arg0: i32) -> (i32, i32) {
    %c0_i32 = arith.constant 0 : i32
    %c0_i32_0 = arith.constant 0 : i32
    %c0_i32_1 = arith.constant 0 : i32
    return %c0_i32, %c0_i32_0 : i32, i32
  }
  func.func @transform_18(%arg0: i32) -> (i32, i32) {
    %c0_i32 = arith.constant 0 : i32
    %c0_i32_0 = arith.constant 0 : i32
    %c0_i32_1 = arith.constant 0 : i32
    return %c0_i32, %c0_i32_0 : i32, i32
  }
  func.func @transform_19(%arg0: i32) -> (i32, i32, i32) {
    %c0_i32 = arith.constant 0 : i32
    %c0_i32_0 = arith.constant 0 : i32
    %c0_i32_1 = arith.constant 0 : i32
    return %arg0, %c0_i32, %c0_i32_0 : i32, i32, i32
  }
}

</mosaic_0001>

<bundles_post_ra>
// kernel: tpu_custom_call.1
= control target key start
LH: loop header
LB: loop body
LE: loop exit
PB: predicated region body
PF: predicated region fallthrough
CT: control target
= control target key end

     0   :  { %s2764_s0 = inlined_call_operand.vmem [shape: f32[2,8,32], index: 0, kind: input, shape index: {}]   ;;  %s2765_s1 = inlined_call_operand.vmem [shape: f32[2,16,48], index: 1, kind: input, shape index: {}]   ;;  %s2766_s2 = inlined_call_operand.vmem [shape: f32[1,32], index: 2, kind: input, shape index: {}]   ;;  %s2767_s3 = inlined_call_operand.hbm [shape: f32[1,32], index: 3, kind: input, shape index: {}]   ;;  %s2768_s4 = inlined_call_operand.vmem [shape: f32[32,96], index: 4, kind: input, shape index: {}]   ;;  %s2769_s5 = inlined_call_operand.vmem [shape: f32[32,32], index: 5, kind: input, shape index: {}]   ;;  %s2770_s6 = inlined_call_operand.vmem [shape: f32[1,32], index: 6, kind: input, shape index: {}]   ;;  %s2771_s7 = inlined_call_operand.vmem [shape: f32[1,32], index: 7, kind: input, shape index: {}]   ;;  %s2772_s8 = inlined_call_operand.vmem [shape: f32[1,32], index: 8, kind: input, shape index: {}]   ;;  %s2773_s9 = inlined_call_operand.hbm [shape: f32[32,32], index: 9, kind: input, shape index: {}]   ;;  %s2774_s10 = inlined_call_operand.vmem [shape: f32[48,64], index: 10, kind: input, shape index: {}]   ;;  %s2775_s11 = inlined_call_operand.hbm [shape: f32[32,32], index: 11, kind: input, shape index: {}]   ;;  %s2776_s12 = inlined_call_operand.vmem [shape: f32[1,32], index: 12, kind: input, shape index: {}]   ;;  %s2777_s13 = inlined_call_operand.vmem [shape: f32[1,32], index: 13, kind: input, shape index: {}]   ;;  %s2778_s14 = inlined_call_operand.vmem [shape: f32[1,32], index: 14, kind: input, shape index: {}]   ;;  %s2779_s15 = inlined_call_operand.hbm [shape: f32[32,128], index: 15, kind: input, shape index: {}]   ;;  %s2780_s16 = inlined_call_operand.vmem [shape: f32[1,128], index: 16, kind: input, shape index: {}]   ;;  %s2781_s17 = inlined_call_operand.vmem [shape: f32[128,32], index: 17, kind: input, shape index: {}]   ;;  %s2782_s18 = inlined_call_operand.vmem [shape: f32[1,32], index: 18, kind: input, shape index: {}]   ;;  %s2783_s19 = inlined_call_operand.hbm [shape: f32[2,8,32], index: 19, kind: output, shape index: {}]  }
   0x1   :  { %2801 = sst [smem:[#allocation22_spill]] %s2764_s0 }
   0x2   :  { %2802 = sst [smem:[#allocation23_spill]] %s2765_s1 }
   0x3   :  { %2803 = sst [smem:[#allocation24_spill]] %s2766_s2 }
   0x4   :  { %2804 = sst [smem:[#allocation25_spill]] %s2767_s3 }
   0x5   :  { %2805 = sst [smem:[#allocation26_spill]] %s2773_s9 }
   0x6   :  { %2806 = sst [smem:[#allocation27_spill]] %s2780_s16 }
   0x7   :  { %2807 = sst [smem:[#allocation28_spill]] %s2782_s18 }
   0x8   :  { %2808 = sst [smem:[#allocation29_spill]] %s2783_s19 }
   0x9   :  { %24 = vsyncpa [#allocation3], 0 }
   0xa   :  { %25 = vsyncpa [#allocation6], 0 }
   0xb   :  { %26 = vsyncpa [#allocation9], 0 }
   0xc   :  { %27 = vsyncpa [#allocation4], 0 }
   0xd   :  { %29 = vsyncpa [#allocation4 + $0x1], 0  ;;  %s2377_s0 = smov 0   ;;  %s2379_s30 = smov 0  }
   0xe   :  { %s2381_s20 = smov 0   ;;  %s2383_s21 = smov 0  }
   0xf LB: > { %2809 = sst [smem:[#allocation15_spill]] %s2242_s0  ;;  %s2398_s1 = sadd.s32 4294967295, %s2254_s21   ;;  %s2254_s21 = sphi %s2383_s21, %s2839_s21   ;;  %s2250_s20 = sphi %s2381_s20, %s2841_s20   ;;  %s2246_s30 = sphi %s2379_s30, %s2843_s30   ;;  %s2242_s0 = sphi %s2377_s0, %s2842_s0  }
  0x10   : > { %2810 = sst [smem:[#allocation16_spill]] %s2250_s20  ;;  %s1835_s22 = sadd.s32 4294967294, %s2254_s21  }
  0x11   : > { %2811 = sst [smem:[#allocation17_spill]] %s2254_s21  ;;  %s2402_s2 = sadd.s32 1, %s2254_s21  }
  0x12   : > { %2812 = sst [smem:[#allocation18_spill]] %s2402_s2  ;;  %s451_s23 = sadd.s32 1, %s2250_s20 }
  0x13   : > { %s448_s24 = ssub.s32 %s2254_s21, %s2402_s2  ;;  %p461_p0 = scmp.ne.s32.totalorder %s2250_s20, %s2246_s30 }
  0x14   : > { %p449_p1 = scmp.eq.s32.totalorder %s448_s24, 0  ;;  %p462_p2 = scmp.eq.s32.totalorder %s2398_s1, 1 }
  0x15   : > { %p467_p3 = scmp.ne.s32.totalorder %s2246_s30, %s2242_s0  ;;  %p468_p4 = scmp.eq.s32.totalorder %s1835_s22, 1 }
  0x16   : > { %s2413_s25 = scalar_select %p449_p1, %s2250_s20, %s451_s23  }
  0x17   : > { %p2415_p5 = por %p462_p2, %p461_p0  ;;  %p2419_p6 = por %p468_p4, %p467_p3 }
  0x18   : > { %2813 = sst [smem:[#allocation19_spill]] %s2413_s25  ;;  %p1836_p7 = scmp.ge.s32.totalorder %s2254_s21, 1 }
  0x19   : > { %s2814_s3 = scalar_select %p2415_p5, 1, 0 }
  0x1a   : > { %s2816_s26 = scalar_select %p2419_p6, 1, 0 }
  0x1b   : > { %2815 = sst [smem:[#allocation20_spill]] %s2814_s3  ;;  %p475_p8 = scmp.lt.s32.totalorder %s2254_s21, 3 }
  0x1c   : > { %2817 = sst [smem:[#allocation21_spill]] %s2816_s26  ;;  %p1926_p9 = scmp.eq.s32.totalorder %s2398_s1, 0 }
  0x1d   : > { %p2426_p10 = pnand %p1836_p7, %p475_p8  ;;  %s2819_s9 = sld [smem:[#allocation26_spill]] }
  0x1e   : > { %s2256_s23 = smov [#allocation5]   ;;  %s2821_s26 = sld [smem:[#allocation25_spill]] }
  0x1f   : > { %p1909_p11 = pneg %p2426_p10  ;;  %s518_s24 = sshll.u32 %s2256_s23, 4  ;;  %s519_s24 = int_to_ptr.vmem [resolvable:$true] %s518_s24 }
  0x20   : > { %s2257_s28 = smov 128   ;;  %s2258_s29 = smov 8  }
  0x21   : > { %p2437_p12 = pnand %p1926_p9, %p1909_p11  ;;  %s2259_s23 = smov [#allocation2]  }
  0x22   : > { %s533_s19 = sshll.u32 %s2775_s11, 4  ;;  %s2260_s18 = smov [#allocation7]   ;;  %s534_s19 = int_to_ptr.hbm [resolvable:$true] %s533_s19 }
  0x23   : > { %s516_s22 = sshll.u32 %s2819_s9, 4  ;;  %s492_s9 = sshll.u32 %s2259_s23, 4  ;;  %s517_s22 = int_to_ptr.hbm [resolvable:$true] %s516_s22  ;;  %s493_s9 = int_to_ptr.vmem [resolvable:$true] %s492_s9 }
  0x24   : > { %s490_s0 = sshll.u32 %s2821_s26, 4  ;;  %s556_s26 = sshll.u32 %s2779_s15, 4  ;;  %s491_s0 = int_to_ptr.hbm [resolvable:$true] %s490_s0  ;;  %s557_s26 = int_to_ptr.hbm [resolvable:$true] %s556_s26 }
  0x25   : > { %1915 = dma.hbm_to_vmem [thread:$0]  (!%p2437_p12), %s517_s22, 512, %s519_s24, [#allocation6], %s2257_s28, %s2257_s28, %s2258_s29  }
  0x26   : > { %1912 = dma.hbm_to_vmem [thread:$0]  (!%p2437_p12), %s491_s0, 16, %s493_s9, [#allocation3]  }
  0x27   : > { %s535_s16 = sshll.u32 %s2260_s18, 4  ;;  %s2261_s22 = smov [#allocation8]   ;;  %s536_s16 = int_to_ptr.vmem [resolvable:$true] %s535_s16 }
  0x28   : > { %1918 = dma.hbm_to_vmem [thread:$0]  (!%p2437_p12), %s534_s19, 512, %s536_s16, [#allocation6], %s2257_s28, %s2257_s28, %s2258_s29  }
  0x29   : > { %s558_s24 = sshll.u32 %s2261_s22, 4  ;;  %598 = sbr.rel (%p2426_p10) target bundleno = 3468 (0xd8c), region = 96  ;;  %s559_s24 = int_to_ptr.vmem [resolvable:$true] %s558_s24 }
  0x2a   : > { %1921 = dma.hbm_to_vmem [thread:$0]  (!%p2437_p12), %s557_s26, 512, %s559_s24, [#allocation9], %s2257_s28, %s2257_s28, %s2258_s29  }
  0x2e   : > { %2225 = dma.done.wait (%p1926_p9), [#allocation3], 16  }
  0x2f   : > { %2227 = vsyncadd (%p1926_p9), [#allocation3], 4294967280 }
  0x30   : > { %2229 = dma.done.wait (%p1926_p9), [#allocation6], 1024  }
  0x31   : > { %2231 = vsyncadd (%p1926_p9), [#allocation6], 4294966272 }
  0x32   : > { %2233 = dma.done.wait (%p1926_p9), [#allocation9], 512  }
  0x33   : > { %2235 = vsyncadd (%p1926_p9), [#allocation9], 4294966784  ;;  %p674_p13 = scmp.lt.s32.totalorder %s2398_s1, 1  ;;  %s2822_s0 = sld [smem:[#allocation22_spill]]  ;;  %vm696_vm0 = vcmask 261120   ;;  %v2262_v2 = vmov 32.0  }
  0x34   : > { %2018 = vrcp.f32 %v2262_v2  ;;  %v737_v14 = vld [vmem:[%s2768_s4 + $0x18] sm:$0xff]  ;;  %v736_v15 = vld [vmem:[%s2768_s4 + $0x10] sm:$0xff]  ;;  %v735_v16 = vld [vmem:[%s2768_s4 + $0x8] sm:$0xff]  ;;  %s2823_s24 = sld [smem:[#allocation24_spill]]  ;;  %s2797_s18 = smov 88   ;;  %vm764_vm5 = vcmask 64512  }
  0x35   : > { %s2474_s9 = scalar_select %p674_p13, %s2398_s1, 1  ;;  %753 = vmatpush.msra.mxu0 %v737_v14  ;;  %v734_v17 = vld [vmem:[%s2768_s4] sm:$0xff] }
  0x36   : > { %v2009_v30 = vld [vmem:[#allocation2] ss:$0 sm:$0xff]  ;;  %s2265_s19 = smov 120   ;;  %s2796_s25 = smov 72  }
  0x37   : > { %s1848_s16 = sshll.u32 %s2474_s9, 3  ;;  %754 = vmatpush.msra.mxu0 %v736_v15  ;;  %s2269_s3 = smov 112  }
  0x38   : > { %s2270_s27 = smov 64   ;;  %s2799_s28 = smov 104  }
  0x39   : > { %s677_s21 = scalar_lea.vmem %s2822_s0, %s1848_s16  ;;  %755 = vmatpush.msra.mxu0 %v735_v16  ;;  %s2263_s16 = smov 96  }
  0x3a   : > { %v2480_v0 = vld [vmem:[%s677_s21] sm:$0xff]  ;;  %v2019_v3 = vpop.eup %2018  ;;  %s2266_s0 = smov 56   ;;  %s2798_s21 = smov 80  }
  0x3b   : > { %v697_v1 = vsel %vm696_vm0, %v2480_v0, 0.0  ;;  %v701_v4 = vmul.f32 32.0, %v2019_v3  ;;  %vm705_vm1 = vweird.f32 %v2019_v3  ;;  %756 = vmatpush.msra.mxu0 %v734_v17  ;;  %v2008_v27 = vld [vmem:[%s2823_s24] ss:$0 sm:$0xff]  ;;  %s2272_s29 = smov 48   ;;  %s2273_s23 = smov 40  }
  0x3c   : > { %698 = vadd.xlane.f32.xlu0 %v697_v1  ;;  %s2794_s20 = smov 8   ;;  %s2793_s2 = smov 24  }
  0x3d   : > { %v702_v5 = vsub.f32 1.0, %v701_v4  ;;  %s2795_s26 = smov 16  }
  0x3f   : > { %v703_v6 = vmul.f32 %v2019_v3, %v702_v5 }
  0x41   : > { %v704_v7 = vadd.f32 %v2019_v3, %v703_v6 }
  0x43   : > { %v2484_v8 = vsel %vm705_vm1, %v2019_v3, %v704_v7 }
  0xaf   : > { %v699_v9 = vpop.xlane.xlu0 %698 }
  0xb0   : > { %v707_v10 = vmul.f32 %v2484_v8, %v699_v9 }
  0xb2   : > { %v708_v11 = vsub.f32 %v2480_v0, %v707_v10 }
  0xb4   : > { %v709_v12 = vmul.f32 %v708_v11, %v708_v11 }
  0xb6   : > { %v710_v13 = vsel %vm696_vm0, %v709_v12, 0.0 }
  0xb7   : > { %711 = vadd.xlane.f32.xlu0 %v710_v13 }
 0x12a   : > { %v712_v18 = vpop.xlane.xlu0 %711 }
 0x12b   : > { %v713_v19 = vmul.f32 %v712_v18, %v2484_v8 }
 0x12d   : > { %v714_v20 = vadd.f32 1e-05, %v713_v19 }
 0x12f   : > { %2020 = vrsqrt.f32 %v714_v20  ;;  %vm721_vm3 = vweird.f32 %v714_v20 }
 0x135   : > { %v2021_v21 = vpop.eup %2020 }
 0x136   : > { %v716_v22 = vmul.f32 %v2021_v21, %v714_v20  ;;  %vm722_vm2 = vweird.f32 %v2021_v21 }
 0x137   : > { %vm723_vm4 = vmor %vm721_vm3, %vm722_vm2 }
 0x138   : > { %v717_v23 = vmul.f32 %v2021_v21, %v716_v22 }
 0x13a   : > { %v718_v24 = vmul.f32 0.5, %v717_v23 }
 0x13c   : > { %v719_v25 = vsub.f32 1.5, %v718_v24 }
 0x13e   : > { %v720_v26 = vmul.f32 %v2021_v21, %v719_v25 }
 0x140   : > { %v724_v28 = vsel %vm723_vm4, %v2021_v21, %v720_v26 }
 0x141   : > { %v725_v29 = vmul.f32 %v724_v28, %v708_v11 }
 0x143   : > { %v729_v31 = vmul.f32 %v2008_v27, %v725_v29 }
 0x145   : > { %v733_v32 = vadd.f32 %v2009_v30, %v729_v31 }
 0x147   : > { %1851 = vmatmul.msk.f32.vlgmr.msra.gmra.mxu0 %vm696_vm0, %v733_v32 }
 0x1c4   : > { %v2506_v33 = vpop.f32.mrf.mxu0 }
 0x1c5   : > { %762 = vrot.lane.b32.xlu2 %v2506_v33, %s2263_s16  ;;  %841 = vrot.lane.b32.xlu1 %v2506_v33, %s2797_s18  ;;  %s671_s18 = sand.u32 1, %s2246_s30  }
 0x1cd   : > { %839 = vrot.lane.b32.xlu1 %v2506_v33, %s2265_s19 }
 0x1d5   : > { %876 = vrot.lane.b32.xlu1 %v2506_v33, %s2266_s0  ;;  %s2824_s0 = sld [smem:[#allocation23_spill]] }
 0x1dd   : > { %919 = vrot.lane.b32.xlu1 %v2506_v33, %s2798_s21  ;;  %s1847_s21 = sshll.u32 %s671_s18, 3 }
 0x1e5   : > { %997 = vrot.lane.b32.xlu1 %v2506_v33, %s2796_s25  ;;  %s1887_s25 = sshll.u32 %s2398_s1, 3  ;;  %s1708_s1 = scalar_lea.sflag [#allocation4], %s671_s18 }
 0x1ed   : > { %917 = vrot.lane.b32.xlu1 %v2506_v33, %s2269_s3 }
 0x21f   : > { %v763_v34 = vpop.permute.xlu2 %762 }
 0x220   : > { %1852 = vmatpush.xpose.msk.msra.mxu1 %vm764_vm5, %v763_v34 }
 0x223   : > { %1853 = vmatmul.msk.f32.vlgmr.msra.gmra.mxu1 %vm764_vm5, %v2506_v33 }
 0x237   : > { %v842_v35 = vpop.permute.xlu1 %841 }
 0x238   : > { %1855 = vmatpush.xpose.msk.msra.mxu3 %vm764_vm5, %v842_v35 }
 0x23f   : > { %v840_v36 = vpop.permute.xlu1 %839 }
 0x240   : > { %1856 = vmatmul.msk.f32.vlgmr.msra.gmra.mxu3 %vm764_vm5, %v840_v36 }
 0x247   : > { %v877_v37 = vpop.permute.xlu1 %876 }
 0x248   : > { %897 = vmatpush.msrb.mxu1 %v877_v37 }
 0x24f   : > { %v920_v38 = vpop.permute.xlu1 %919 }
 0x250   : > { %1858 = vmatpush.xpose.msk.msra.mxu1 %vm764_vm5, %v920_v38 }
 0x257   : > { %v998_v48 = vpop.permute.xlu1 %997 }
 0x25f   : > { %v918_v56 = vpop.permute.xlu1 %917 }
 0x2a0   : > { %v786_v39 = vpop.f32.mrf.mxu1 }
 0x2a1   : > { %v789_v40 = vsel %vm764_vm5, %v786_v39, -inf }
 0x2a2   : > { %790 = vmax.xlane.f32.xlu0 %v789_v40 }
 0x2b6   : > { %798 = vrot.lane.b32.xlu0 %v2506_v33, %s2270_s27 }
 0x2be   : > { %995 = vrot.lane.b32.xlu0 %v2506_v33, %s2799_s28  ;;  %s2825_s28 = smov 104  }
 0x2c3   : > { %v864_v41 = vpop.f32.mrf.mxu3 }
 0x2c4   : > { %v867_v42 = vsel %vm764_vm5, %v864_v41, -inf }
 0x2c5   : > { %868 = vmax.xlane.f32.xlu2 %v867_v42 }
 0x2c6   : > { %954 = vrot.lane.b32.xlu0 %v2506_v33, %s2272_s29  ;;  %s2827_s29 = smov 88  }
 0x315   : > { %v791_v43 = vpop.xlane.xlu0 %790 }
 0x316   : > { %v792_v44 = vsub.f32 %v786_v39, %v791_v43 }
 0x318   : > { %v793_v45 = vmul.f32 1.442695, %v792_v44 }
 0x31a   : > { %2022 = vpow2.f32 %v793_v45 }
 0x320   : > { %v2023_v47 = vpop.eup %2022 }
 0x321   : > { %v795_v19 = vsel %vm764_vm5, %v2023_v47, 0.0 }
 0x328   : > { %v799_v46 = vpop.permute.xlu0 %798 }
 0x329   : > { %819 = vmatpush.msrb.mxu0 %v799_v46 }
 0x32a   : > { %1854 = vmatmul.msk.f32.vlgmr.msrb.gmra.mxu0 %vm764_vm5, %v2023_v47 }
 0x32b   : > { %1861 = vmatpush.xpose.msk.msra.mxu0 %vm764_vm5, %v998_v48 }
 0x330   : > { %v996_v49 = vpop.permute.xlu0 %995 }
 0x332   : > { %1862 = vmatmul.msk.f32.vlgmr.msra.gmra.mxu0 %vm764_vm5, %v996_v49 }
 0x338   : > { %v955_v50 = vpop.permute.xlu0 %954  ;;  %v869_v51 = vpop.xlane.xlu2 %868 }
 0x339   : > { %v870_v52 = vsub.f32 %v864_v41, %v869_v51  ;;  %975 = vmatpush.msrb.mxu3 %v955_v50  ;;  %v1093_v51 = vld [vmem:[%s2769_s5 + $0x18] sm:$0xff] }
 0x33b   : > { %v871_v53 = vmul.f32 1.442695, %v870_v52  ;;  %v1092_v52 = vld [vmem:[%s2769_s5 + $0x10] sm:$0xff] }
 0x33d   : > { %2024 = vpow2.f32 %v871_v53  ;;  %v1091_v53 = vld [vmem:[%s2769_s5 + $0x8] sm:$0xff] }
 0x343   : > { %v2025_v54 = vpop.eup %2024 }
 0x344   : > { %1857 = vmatmul.msk.f32.vlgmr.msrb.gmra.mxu1 %vm764_vm5, %v2025_v54  ;;  %v873_v55 = vsel %vm764_vm5, %v2025_v54, 0.0 }
 0x345   : > { %874 = vadd.xlane.f32.xlu0 %v873_v55  ;;  %1112 = vmatpush.msrb.mxu1 %v1093_v51  ;;  %v1090_v55 = vld [vmem:[%s2769_s5] sm:$0xff] }
 0x347   : > { %1113 = vmatpush.msrb.mxu1 %v1092_v52 }
 0x349   : > { %1114 = vmatpush.msrb.mxu1 %v1091_v53 }
 0x34b   : > { %1115 = vmatpush.msrb.mxu1 %v1090_v55 }
 0x34c   : > { %1859 = vmatmul.msk.f32.vlgmr.msra.gmra.mxu1 %vm764_vm5, %v918_v56 }
 0x3a7   : > { %v2539_v57 = vpop.f32.mrf.mxu0 }
 0x3af   : > { %v1020_v58 = vpop.f32.mrf.mxu0 }
 0x3b0   : > { %v1023_v59 = vsel %vm764_vm5, %v1020_v58, -inf }
 0x3b1   : > { %1024 = vmax.xlane.f32.xlu2 %v1023_v59 }
 0x3b8   : > { %v875_v60 = vpop.xlane.xlu0 %874 }
 0x3b9   : > { %2026 = vrcp.f32 %v875_v60  ;;  %v913_v2 = vand.u32 2147483648, %v875_v60  ;;  %v911_v4 = vand.u32 2147483647, %v875_v60  ;;  %vm907_vm7 = vweird.f32 %v875_v60 }
 0x3bb   : > { %v914_v6 = vor.u32 1.1754944e-38, %v913_v2  ;;  %vm912_vm9 = vcmp.eq.f32.partialorder %v911_v4, 8.507059e+37 }
 0x3bf   : > { %v2027_v61 = vpop.eup %2026 }
 0x3c0   : > { %v903_v62 = vmul.f32 %v2027_v61, %v875_v60  ;;  %vm908_vm6 = vweird.f32 %v2027_v61 }
 0x3c1   : > { %v899_v63 = vpop.f32.mrf.mxu1  ;;  %vm909_vm8 = vmor %vm907_vm7, %vm908_vm6 }
 0x3c2   : > { %v904_v1 = vsub.f32 1.0, %v903_v62 }
 0x3c4   : > { %v905_v3 = vmul.f32 %v2027_v61, %v904_v1 }
 0x3c6   : > { %v906_v5 = vadd.f32 %v2027_v61, %v905_v3 }
 0x3c8   : > { %v910_v7 = vsel %vm909_vm8, %v2027_v61, %v906_v5  ;;  %vm1086_vm8 = vcmask 130048  }
 0x3c9   : > { %v915_v9 = vsel %vm912_vm9, %v914_v6, %v910_v7  ;;  %1032 = vrot.lane.b32.xlu2 %v2506_v33, %s2273_s23  ;;  %v942_v10 = vpop.f32.mrf.mxu1  ;;  %vm1088_vm9 = vcmask 195584   ;;  %s2831_s23 = smov 24  }
 0x3ca   : > { %v916_v11 = vmul.f32 %v915_v9, %v899_v63  ;;  %v945_v12 = vsel %vm764_vm5, %v942_v10, -inf }
 0x3cb   : > { %946 = vmax.xlane.f32.xlu1 %v945_v12  ;;  %v2010_v12 = vld [vmem:[%s2770_s6] ss:$0 sm:$0xff] }
 0x3cc   : > { %1074 = vrot.lane.b32.xlu0 %v916_v11, %s2794_s20  ;;  %s1890_s20 = sshll.u32 %s2474_s9, 4  ;;  %s2832_s9 = sld [smem:[#allocation27_spill]] }
 0x3cd   : > { %s682_s27 = scalar_lea.vmem %s2824_s0, %s1890_s20 }
 0x424   : > { %v1025_v13 = vpop.xlane.xlu2 %1024 }
 0x425   : > { %v1026_v14 = vsub.f32 %v1020_v58, %v1025_v13 }
 0x427   : > { %v1027_v15 = vmul.f32 1.442695, %v1026_v14 }
 0x429   : > { %2028 = vpow2.f32 %v1027_v15 }
 0x42c   : > { %v1033_v16 = vpop.permute.xlu2 %1032 }
 0x42d   : > { %1053 = vmatpush.msra.mxu2 %v1033_v16  ;;  %v1183_v16 = vld [vmem:[%s2774_s10 + $0x28] sm:$0xff] }
 0x42e   : > { %1201 = vmatpush.msrb.mxu0 %v1183_v16 }
 0x42f   : > { %v2029_v17 = vpop.eup %2028 }
 0x430   : > { %1863 = vmatmul.msk.f32.vlgmr.msra.gmra.mxu2 %vm764_vm5, %v2029_v17  ;;  %v1029_v18 = vsel %vm764_vm5, %v2029_v17, 0.0  ;;  %v1182_v17 = vld [vmem:[%s2774_s10 + $0x20] sm:$0xff] }
 0x431   : > { %1030 = vadd.xlane.f32.xlu1 %v1029_v18  ;;  %v1181_v18 = vld [vmem:[%s2774_s10 + $0x18] sm:$0xff]  ;;  %1202 = vmatpush.msrb.mxu0 %v1182_v17 }
 0x433   : > { %1203 = vmatpush.msrb.mxu0 %v1181_v18 }
 0x439   : > { %796 = vadd.xlane.f32.xlu1 %v795_v19  ;;  %v1179_v19 = vld [vmem:[%s2774_s10 + $0x8] sm:$0xff] }
 0x43e   : > { %v947_v20 = vpop.xlane.xlu1 %946  ;;  %v1075_v3 = vpop.permute.xlu0 %1074 }
 0x43f   : > { %v948_v21 = vsub.f32 %v942_v10, %v947_v20  ;;  %v1178_v20 = vld [vmem:[%s2774_s10] sm:$0xff] }
 0x441   : > { %v949_v22 = vmul.f32 1.442695, %v948_v21  ;;  %v694_v21 = vld [vmem:[%s682_s27] sm:$0xff] }
 0x443   : > { %2030 = vpow2.f32 %v949_v22 }
 0x449   : > { %v2031_v23 = vpop.eup %2030 }
 0x44a   : > { %1860 = vmatmul.msk.f32.vlgmr.msrb.gmra.mxu3 %vm764_vm5, %v2031_v23  ;;  %v951_v24 = vsel %vm764_vm5, %v2031_v23, 0.0 }
 0x44b   : > { %952 = vadd.xlane.f32.xlu2 %v951_v24 }
 0x4a4   : > { %v1031_v25 = vpop.xlane.xlu1 %1030 }
 0x4a5   : > { %2032 = vrcp.f32 %v1031_v25  ;;  %v1069_v29 = vand.u32 2147483648, %v1031_v25  ;;  %v1067_v31 = vand.u32 2147483647, %v1031_v25  ;;  %vm1063_vm11 = vweird.f32 %v1031_v25 }
 0x4a7   : > { %v1070_v33 = vor.u32 1.1754944e-38, %v1069_v29  ;;  %vm1068_vm13 = vcmp.eq.f32.partialorder %v1067_v31, 8.507059e+37  ;;  %v1153_v29 = vld [vmem:[#allocation5 + $0x10] sm:$0xff]  ;;  %v1151_v31 = vld [vmem:[#allocation5] sm:$0xff] }
 0x4ab   : > { %v2033_v26 = vpop.eup %2032 }
 0x4ac   : > { %v1059_v27 = vmul.f32 %v2033_v26, %v1031_v25  ;;  %vm1064_vm10 = vweird.f32 %v2033_v26  ;;  %v797_v54 = vpop.xlane.xlu1 %796 }
 0x4ad   : > { %vm1065_vm12 = vmor %vm1063_vm11, %vm1064_vm10  ;;  %v835_v62 = vand.u32 2147483648, %v797_v54  ;;  %vm829_vm4 = vweird.f32 %v797_v54  ;;  %v833_v63 = vand.u32 2147483647, %v797_v54  ;;  %vm1184_vm10 = vcmask 392192  }
 0x4ae   : > { %v1060_v28 = vsub.f32 1.0, %v1059_v27  ;;  %v695_v27 = vld [vmem:[%s682_s27 + $0x8] sm:$0xff] }
 0x4af   : > { %v836_v2 = vor.u32 1.1754944e-38, %v835_v62  ;;  %vm834_vm7 = vcmp.eq.f32.partialorder %v833_v63, 8.507059e+37 }
 0x4b0   : > { %v1061_v30 = vmul.f32 %v2033_v26, %v1060_v28  ;;  %v1154_v28 = vld [vmem:[#allocation5 + $0x18] sm:$0xff] }
 0x4b1   : > { %1170 = vmatpush.msra.mxu3 %v1154_v28 }
 0x4b2   : > { %v1062_v32 = vadd.f32 %v2033_v26, %v1061_v30  ;;  %v1152_v30 = vld [vmem:[#allocation5 + $0x8] sm:$0xff] }
 0x4b3   : > { %v1055_v35 = vpop.f32.mrf.mxu2  ;;  %1171 = vmatpush.msra.mxu3 %v1153_v29 }
 0x4b4   : > { %v1066_v34 = vsel %vm1065_vm12, %v2033_v26, %v1062_v32 }
 0x4b5   : > { %v1071_v36 = vsel %vm1068_vm13, %v1070_v33, %v1066_v34  ;;  %1172 = vmatpush.msra.mxu3 %v1152_v30 }
 0x4b6   : > { %v1072_v37 = vmul.f32 %v1071_v36, %v1055_v35 }
 0x4b7   : > { %1173 = vmatpush.msra.mxu3 %v1151_v31 }
 0x4b8   : > { %1082 = vrot.lane.b32.xlu0 %v1072_v37, %s2793_s2  ;;  %s673_s2 = scalar_lea.vmem [#allocation10], %s1847_s21 }
 0x4b9   : > { %s1720_s22 = sshll.u32 %s673_s2, 4  ;;  %s1721_s22 = int_to_ptr.vmem [resolvable:$true] %s1720_s22 }
 0x4be   : > { %v953_v38 = vpop.xlane.xlu2 %952 }
 0x4bf   : > { %2034 = vrcp.f32 %v953_v38  ;;  %v991_v42 = vand.u32 2147483648, %v953_v38  ;;  %v989_v44 = vand.u32 2147483647, %v953_v38  ;;  %vm985_vm15 = vweird.f32 %v953_v38 }
 0x4c0   : > { %2036 = vrcp.f32 %v797_v54 }
 0x4c1   : > { %v992_v46 = vor.u32 1.1754944e-38, %v991_v42  ;;  %vm990_vm2 = vcmp.eq.f32.partialorder %v989_v44, 8.507059e+37  ;;  %v2011_v42 = vld [vmem:[%s2771_s7] ss:$0 sm:$0xff] }
 0x4c5   : > { %v2035_v39 = vpop.eup %2034 }
 0x4c6   : > { %v981_v40 = vmul.f32 %v2035_v39, %v953_v38  ;;  %vm986_vm14 = vweird.f32 %v2035_v39  ;;  %v2037_v56 = vpop.eup %2036 }
 0x4c7   : > { %vm987_vm1 = vmor %vm985_vm15, %vm986_vm14  ;;  %v825_v58 = vmul.f32 %v2037_v56, %v797_v54  ;;  %vm830_vm3 = vweird.f32 %v2037_v56 }
 0x4c8   : > { %v982_v41 = vsub.f32 1.0, %v981_v40  ;;  %vm831_vm6 = vmor %vm829_vm4, %vm830_vm3 }
 0x4c9   : > { %v826_v59 = vsub.f32 1.0, %v825_v58 }
 0x4ca   : > { %v983_v43 = vmul.f32 %v2035_v39, %v982_v41 }
 0x4cb   : > { %v827_v60 = vmul.f32 %v2037_v56, %v826_v59 }
 0x4cc   : > { %v984_v45 = vadd.f32 %v2035_v39, %v983_v43 }
 0x4cd   : > { %v977_v48 = vpop.f32.mrf.mxu3  ;;  %v828_v61 = vadd.f32 %v2037_v56, %v827_v60 }
 0x4ce   : > { %v988_v47 = vsel %vm987_vm1, %v2035_v39, %v984_v45  ;;  %v2012_v45 = vld [vmem:[%s2772_s8] ss:$0 sm:$0xff] }
 0x4cf   : > { %v993_v49 = vsel %vm990_vm2, %v992_v46, %v988_v47  ;;  %v832_v1 = vsel %vm831_vm6, %v2037_v56, %v828_v61 }
 0x4d0   : > { %v994_v50 = vmul.f32 %v993_v49, %v977_v48  ;;  %v837_v4 = vsel %vm834_vm7, %v836_v2, %v832_v1 }
 0x4d1   : > { %v838_v5 = vmul.f32 %v837_v4, %v2539_v57 }
 0x4d2   : > { %1078 = vrot.lane.b32.xlu1 %v994_v50, %s2795_s26  ;;  %s2826_s26 = smov 80  }
 0x4d3   : > { %v1085_v6 = vsel %vm764_vm5, %v838_v5, %v1075_v3 }
 0x52a   : > { %v1083_v9 = vpop.permute.xlu0 %1082 }
 0x544   : > { %v1079_v7 = vpop.permute.xlu1 %1078 }
 0x545   : > { %v1087_v10 = vsel %vm1086_vm8, %v1085_v6, %v1079_v7 }
 0x546   : > { %v1089_v11 = vsel %vm1088_vm9, %v1087_v10, %v1083_v9 }
 0x547   : > { %1864 = vmatmul.msk.f32.vlgmr.msrb.gmra.mxu1 %vm696_vm0, %v1089_v11 }
 0x5c4   : > { %v1117_v13 = vpop.f32.mrf.mxu1 }
 0x5c5   : > { %v1118_v14 = vadd.f32 %v2010_v12, %v1117_v13 }
 0x5c7   : > { %v2573_v57 = vadd.f32 %v1118_v14, %v2480_v0  ;;  %v1180_v0 = vld [vmem:[%s2774_s10 + $0x10] sm:$0xff] }
 0x5c8   : > { %1204 = vmatpush.msrb.mxu0 %v1180_v0 }
 0x5c9   : > { %v1121_v15 = vsel %vm696_vm0, %v2573_v57, 0.0 }
 0x5ca   : > { %1122 = vadd.xlane.f32.xlu2 %v1121_v15  ;;  %1205 = vmatpush.msrb.mxu0 %v1179_v19 }
 0x5cc   : > { %1206 = vmatpush.msrb.mxu0 %v1178_v20 }
 0x5cd   : > { %1866 = vmatmul.msk.f32.vlgmr.msrb.gmra.mxu0 %vm1184_vm10, %v694_v21 }
 0x5d5   : > { %1867 = vmatmul.msk.f32.gmra.mxu0 %vm1184_vm10, %v695_v27 }
 0x63d   : > { %v1123_v22 = vpop.xlane.xlu2 %1122 }
 0x63e   : > { %v1124_v23 = vmul.f32 %v1123_v22, %v2484_v8 }
 0x640   : > { %v1125_v24 = vsub.f32 %v2573_v57, %v1124_v23 }
 0x642   : > { %v1126_v25 = vmul.f32 %v1125_v24, %v1125_v24 }
 0x644   : > { %v1127_v26 = vsel %vm696_vm0, %v1126_v25, 0.0 }
 0x645   : > { %1128 = vadd.xlane.f32.xlu0 %v1127_v26 }
 0x64a   : > { %v1208_v32 = vpop.f32.mrf.mxu0 }
 0x64b   : > { %1298 = vrot.lane.b32.xlu1 %v1208_v32, %s2265_s19 }
 0x652   : > { %v1211_v48 = vpop.f32.mrf.mxu0 }
 0x653   : > { %v1988_v49 = vpack.i.bf16 %v1208_v32, %v1211_v48  ;;  %1868 = vmatpush.xpose.msk.msrb.mxu3 %vm764_vm5, %v1211_v48  ;;  %1300 = vrot.lane.b32.xlu2 %v1211_v48, %s2265_s19 }
 0x657   : > { %1869 = vmatpush.xpose.msk.msrb.mxu3 %vm764_vm5, %v1208_v32 }
 0x659   : > { %1989 = vrot.lane.b32.xlu0 %v1988_v49, %s2263_s16  ;;  %s2828_s16 = smov 72  }
 0x661   : > { %1385 = vrot.lane.b32.xlu0 %v1211_v48, %s2269_s3 }
 0x669   : > { %1383 = vrot.lane.b32.xlu0 %v1208_v32, %s2269_s3 }
 0x671   : > { %1468 = vrot.lane.b32.xlu0 %v1208_v32, %s2825_s28 }
 0x6ad   : > { %v1301_v51 = vpop.permute.xlu2 %1300 }
 0x6b8   : > { %v1129_v33 = vpop.xlane.xlu0 %1128 }
 0x6b9   : > { %v1130_v34 = vmul.f32 %v1129_v33, %v2484_v8 }
 0x6bb   : > { %v1131_v35 = vadd.f32 1e-05, %v1130_v34 }
 0x6bd   : > { %2038 = vrsqrt.f32 %v1131_v35  ;;  %vm1138_vm12 = vweird.f32 %v1131_v35  ;;  %v1299_v52 = vpop.permute.xlu1 %1298 }
 0x6c3   : > { %v2039_v36 = vpop.eup %2038 }
 0x6c4   : > { %v1133_v37 = vmul.f32 %v2039_v36, %v1131_v35  ;;  %vm1139_vm11 = vweird.f32 %v2039_v36 }
 0x6c5   : > { %vm1140_vm13 = vmor %vm1138_vm12, %vm1139_vm11 }
 0x6c6   : > { %v1134_v38 = vmul.f32 %v2039_v36, %v1133_v37 }
 0x6c8   : > { %v1135_v39 = vmul.f32 0.5, %v1134_v38 }
 0x6ca   : > { %v1136_v40 = vsub.f32 1.5, %v1135_v39 }
 0x6cb   : > { %v1990_v53 = vpop.permute.xlu0 %1989 }
 0x6cc   : > { %v1137_v41 = vmul.f32 %v2039_v36, %v1136_v40  ;;  %v1992_v54 = vunpack.i.h.bf16 %v1990_v53  ;;  %v1991_v55 = vunpack.i.l.bf16 %v1990_v53 }
 0x6ce   : > { %v1141_v43 = vsel %vm1140_vm13, %v2039_v36, %v1137_v41  ;;  %1275 = vmatpush.msra.mxu1 %v1991_v55 }
 0x6cf   : > { %v1142_v44 = vmul.f32 %v1141_v43, %v1125_v24 }
 0x6d0   : > { %1276 = vmatpush.msra.mxu1 %v1992_v54 }
 0x6d1   : > { %v1146_v46 = vmul.f32 %v2011_v42, %v1142_v44 }
 0x6d3   : > { %v1150_v47 = vadd.f32 %v2012_v45, %v1146_v46  ;;  %v1386_v56 = vpop.permute.xlu0 %1385 }
 0x6d4   : > { %1876 = vmatpush.xpose.msk.msrb.mxu1 %vm764_vm5, %v1386_v56 }
 0x6d5   : > { %1865 = vmatmul.msk.f32.vlgmr.msra.gmra.mxu3 %vm696_vm0, %v1150_v47 }
 0x6d6   : > { %1872 = vmatpush.xpose.msk.msra.mxu3 %vm764_vm5, %v1301_v51 }
 0x6da   : > { %1873 = vmatpush.xpose.msk.msra.mxu3 %vm764_vm5, %v1299_v52 }
 0x6db   : > { %v1384_v58 = vpop.permute.xlu0 %1383 }
 0x6dc   : > { %1877 = vmatpush.xpose.msk.msrb.mxu1 %vm764_vm5, %v1384_v58 }
 0x6e3   : > { %v1469_v59 = vpop.permute.xlu0 %1468 }
 0x758   : > { %v1175_v50 = vpop.f32.mrf.mxu3 }
 0x759   : > { %1466 = vrot.lane.b32.xlu0 %v1175_v50, %s2825_s28  ;;  %1296 = vrot.lane.b32.xlu1 %v1175_v50, %s2265_s19  ;;  %s2829_s19 = smov 16  }
 0x75a   : > { %1870 = vmatmul.msk.f32.vlgmr.msrb.gmra.mxu3 %vm764_vm5, %v1175_v50 }
 0x761   : > { %1999 = vrot.lane.b32.xlu0 %v1988_v49, %s2826_s26  ;;  %1994 = vrot.lane.b32.xlu1 %v1988_v49, %s2827_s29  ;;  %s2833_s29 = sld [smem:[#allocation28_spill]] }
 0x769   : > { %2004 = vrot.lane.b32.xlu0 %v1988_v49, %s2828_s16 }
 0x7cb   : > { %v1467_v60 = vpop.permute.xlu0 %1466  ;;  %v1297_v61 = vpop.permute.xlu1 %1296 }
 0x7cc   : > { %1874 = vmatmul.msk.f32.vlgmr.msra.gmra.mxu3 %vm764_vm5, %v1297_v61 }
 0x7d3   : > { %v2000_v62 = vpop.permute.xlu0 %1999  ;;  %v1995_v63 = vpop.permute.xlu1 %1994 }
 0x7d4   : > { %v2001_v1 = vunpack.i.l.bf16 %v2000_v62  ;;  %v1996_v2 = vunpack.i.l.bf16 %v1995_v63  ;;  %v2002_v3 = vunpack.i.h.bf16 %v2000_v62  ;;  %v1997_v4 = vunpack.i.h.bf16 %v1995_v63 }
 0x7d6   : > { %1360 = vmatpush.msrb.mxu2 %v1996_v2  ;;  %1445 = vmatpush.msrb.mxu3 %v2001_v1 }
 0x7d8   : > { %1361 = vmatpush.msrb.mxu2 %v1997_v4  ;;  %1446 = vmatpush.msrb.mxu3 %v2002_v3  ;;  %v1569_v3 = vld [vmem:[#allocation7 + $0x18] sm:$0xff]  ;;  %v1568_v4 = vld [vmem:[#allocation7 + $0x10] sm:$0xff] }
 0x7db   : > { %v2005_v5 = vpop.permute.xlu0 %2004 }
 0x7dc   : > { %v2006_v6 = vunpack.i.l.bf16 %v2005_v5  ;;  %v2007_v9 = vunpack.i.h.bf16 %v2005_v5  ;;  %v1567_v5 = vld [vmem:[#allocation7 + $0x8] sm:$0xff] }
 0x7dd   : > { %v1240_v7 = vpop.f32.mrf.mxu3 }
 0x7de   : > { %v1243_v10 = vsel %vm1086_vm8, %v1240_v7, -inf  ;;  %1530 = vmatpush.msra.mxu0 %v2006_v6  ;;  %v1566_v6 = vld [vmem:[#allocation7] sm:$0xff] }
 0x7df   : > { %1244 = vmax.xlane.f32.xlu1 %v1243_v10 }
 0x7e0   : > { %1531 = vmatpush.msra.mxu0 %v2007_v9 }
 0x7f8   : > { %1381 = vrot.lane.b32.xlu1 %v1175_v50, %s2269_s3  ;;  %s2830_s3 = smov 8  }
 0x84f   : > { %v1325_v11 = vpop.f32.mrf.mxu3 }
 0x850   : > { %v1328_v12 = vsel %vm1086_vm8, %v1325_v11, -inf }
 0x851   : > { %1329 = vmax.xlane.f32.xlu2 %v1328_v12 }
 0x852   : > { %v1245_v13 = vpop.xlane.xlu1 %1244 }
 0x853   : > { %v1246_v14 = vsub.f32 %v1240_v7, %v1245_v13 }
 0x855   : > { %v1247_v15 = vmul.f32 1.442695, %v1246_v14 }
 0x857   : > { %2040 = vpow2.f32 %v1247_v15 }
 0x85d   : > { %v2041_v16 = vpop.eup %2040 }
 0x85e   : > { %1871 = vmatmul.msk.f32.vlgmr.msra.gmra.mxu1 %vm1086_vm8, %v2041_v16  ;;  %v1249_v34 = vsel %vm1086_vm8, %v2041_v16, 0.0 }
 0x85f   : > { %1588 = vmatpush.msra.mxu1 %v1569_v3 }
 0x861   : > { %1589 = vmatpush.msra.mxu1 %v1568_v4  ;;  %v2015_v4 = vld [vmem:[%s2778_s14] ss:$0 sm:$0xff] }
 0x863   : > { %1590 = vmatpush.msra.mxu1 %v1567_v5 }
 0x865   : > { %1591 = vmatpush.msra.mxu1 %v1566_v6 }
 0x869   : > { %1470 = vrot.lane.b32.xlu2 %v1211_v48, %s2825_s28 }
 0x86a   : > { %v1382_v17 = vpop.permute.xlu1 %1381 }
 0x86b   : > { %1878 = vmatmul.msk.f32.vlgmr.msrb.gmra.mxu1 %vm764_vm5, %v1382_v17 }
 0x8c4   : > { %v1330_v18 = vpop.xlane.xlu2 %1329 }
 0x8c5   : > { %v1331_v0 = vsub.f32 %v1325_v11, %v1330_v18 }
 0x8c7   : > { %v1332_v19 = vmul.f32 1.442695, %v1331_v0 }
 0x8c9   : > { %2042 = vpow2.f32 %v1332_v19 }
 0x8cc   : > { %v1471_v20 = vpop.permute.xlu2 %1470 }
 0x8cd   : > { %1880 = vmatpush.xpose.msk.msra.mxu2 %vm764_vm5, %v1471_v20 }
 0x8cf   : > { %v2043_v21 = vpop.eup %2042 }
 0x8d0   : > { %1875 = vmatmul.msk.f32.vlgmr.msrb.gmra.mxu2 %vm1086_vm8, %v2043_v21  ;;  %v1334_v22 = vsel %vm1086_vm8, %v2043_v21, 0.0 }
 0x8d1   : > { %1335 = vadd.xlane.f32.xlu0 %v1334_v22  ;;  %1881 = vmatpush.xpose.msk.msra.mxu2 %vm764_vm5, %v1469_v59 }
 0x8d8   : > { %1882 = vmatmul.msk.f32.vlgmr.msra.gmra.mxu2 %vm764_vm5, %v1467_v60 }
 0x8db   : > { %v2640_v23 = vpop.f32.mrf.mxu1 }
 0x8e8   : > { %v1410_v24 = vpop.f32.mrf.mxu1 }
 0x8e9   : > { %v1413_v25 = vsel %vm1086_vm8, %v1410_v24, -inf }
 0x8ea   : > { %1414 = vmax.xlane.f32.xlu2 %v1413_v25 }
 0x944   : > { %v1336_v36 = vpop.xlane.xlu0 %1335 }
 0x945   : > { %v1377_v53 = vand.u32 2147483648, %v1336_v36  ;;  %vm1371_vm2 = vweird.f32 %v1336_v36  ;;  %v1375_v55 = vand.u32 2147483647, %v1336_v36 }
 0x947   : > { %v1378_v62 = vor.u32 1.1754944e-38, %v1377_v53  ;;  %vm1376_vm7 = vcmp.eq.f32.partialorder %v1375_v55, 8.507059e+37  ;;  %v1679_v53 = vld [vmem:[%s2781_s17 + $0x68] sm:$0xff] }
 0x953   : > { %v1363_v26 = vpop.f32.mrf.mxu2 }
 0x95b   : > { %v1495_v27 = vpop.f32.mrf.mxu2 }
 0x95c   : > { %v1498_v28 = vsel %vm1086_vm8, %v1495_v27, -inf }
 0x95d   : > { %v1415_v29 = vpop.xlane.xlu2 %1414  ;;  %1499 = vmax.xlane.f32.xlu1 %v1498_v28 }
 0x95e   : > { %v1416_v30 = vsub.f32 %v1410_v24, %v1415_v29 }
 0x960   : > { %v1417_v31 = vmul.f32 1.442695, %v1416_v30 }
 0x962   : > { %2044 = vpow2.f32 %v1417_v31 }
 0x963   : > { %2046 = vrcp.f32 %v1336_v36 }
 0x968   : > { %v2045_v32 = vpop.eup %2044 }
 0x969   : > { %1879 = vmatmul.msk.f32.vlgmr.msrb.gmra.mxu3 %vm1086_vm8, %v2045_v32  ;;  %v1419_v33 = vsel %vm1086_vm8, %v2045_v32, 0.0  ;;  %v2047_v39 = vpop.eup %2046 }
 0x96a   : > { %1420 = vadd.xlane.f32.xlu2 %v1419_v33  ;;  %v1367_v43 = vmul.f32 %v2047_v39, %v1336_v36  ;;  %vm1372_vm15 = vweird.f32 %v2047_v39 }
 0x96b   : > { %vm1373_vm4 = vmor %vm1371_vm2, %vm1372_vm15 }
 0x96c   : > { %v1368_v44 = vsub.f32 1.0, %v1367_v43 }
 0x96e   : > { %v1369_v47 = vmul.f32 %v2047_v39, %v1368_v44 }
 0x970   : > { %v1370_v52 = vadd.f32 %v2047_v39, %v1369_v47 }
 0x972   : > { %1250 = vadd.xlane.f32.xlu2 %v1249_v34  ;;  %v1374_v59 = vsel %vm1373_vm4, %v2047_v39, %v1370_v52  ;;  %v2013_v39 = vld [vmem:[%s2776_s12] ss:$0 sm:$0xff]  ;;  %v1680_v52 = vld [vmem:[%s2781_s17 + $0x70] sm:$0xff] }
 0x973   : > { %v1379_v1 = vsel %vm1376_vm7, %v1378_v62, %v1374_v59 }
 0x974   : > { %v1380_v2 = vmul.f32 %v1379_v1, %v1363_v26 }
 0x9d0   : > { %v1500_v35 = vpop.xlane.xlu1 %1499 }
 0x9d1   : > { %v1501_v37 = vsub.f32 %v1495_v27, %v1500_v35 }
 0x9d3   : > { %v1502_v38 = vmul.f32 1.442695, %v1501_v37 }
 0x9d5   : > { %2048 = vpow2.f32 %v1502_v38 }
 0x9db   : > { %v2049_v40 = vpop.eup %2048 }
 0x9dc   : > { %1883 = vmatmul.msk.f32.vlgmr.msra.gmra.mxu0 %vm1086_vm8, %v2049_v40  ;;  %v1504_v41 = vsel %vm1086_vm8, %v2049_v40, 0.0 }
 0x9dd   : > { %v1421_v42 = vpop.xlane.xlu2 %1420  ;;  %1505 = vadd.xlane.f32.xlu1 %v1504_v41 }
 0x9de   : > { %2050 = vrcp.f32 %v1421_v42  ;;  %v1462_v49 = vand.u32 2147483648, %v1421_v42  ;;  %v1460_v51 = vand.u32 2147483647, %v1421_v42  ;;  %vm1456_vm1 = vweird.f32 %v1421_v42 }
 0x9e0   : > { %v1463_v56 = vor.u32 1.1754944e-38, %v1462_v49  ;;  %vm1461_vm6 = vcmp.eq.f32.partialorder %v1460_v51, 8.507059e+37  ;;  %v1629_v49 = vld [vmem:[#allocation8 + $0x10] sm:$0xff] }
 0x9e1   : > { %v1681_v51 = vld [vmem:[%s2781_s17 + $0x78] sm:$0xff] }
 0x9e2   : > { %1685 = vmatpush.msrb.mxu2 %v1681_v51 }
 0x9e4   : > { %v2051_v45 = vpop.eup %2050  ;;  %1686 = vmatpush.msrb.mxu2 %v1680_v52 }
 0x9e5   : > { %v1452_v46 = vmul.f32 %v2051_v45, %v1421_v42  ;;  %vm1457_vm14 = vweird.f32 %v2051_v45  ;;  %v1251_v20 = vpop.xlane.xlu2 %1250 }
 0x9e6   : > { %vm1458_vm3 = vmor %vm1456_vm1, %vm1457_vm14  ;;  %v1292_v27 = vand.u32 2147483648, %v1251_v20  ;;  %vm1286_vm15 = vweird.f32 %v1251_v20  ;;  %v1290_v28 = vand.u32 2147483647, %v1251_v20  ;;  %1687 = vmatpush.msrb.mxu2 %v1679_v53 }
 0x9e7   : > { %v1453_v48 = vsub.f32 1.0, %v1452_v46 }
 0x9e8   : > { %v1293_v30 = vor.u32 1.1754944e-38, %v1292_v27  ;;  %vm1291_vm2 = vcmp.eq.f32.partialorder %v1290_v28, 8.507059e+37 }
 0x9e9   : > { %v1454_v50 = vmul.f32 %v2051_v45, %v1453_v48  ;;  %v1630_v48 = vld [vmem:[#allocation8 + $0x18] sm:$0xff] }
 0x9ea   : > { %1649 = vmatpush.msra.mxu3 %v1630_v48 }
 0x9eb   : > { %v1455_v54 = vadd.f32 %v2051_v45, %v1454_v50  ;;  %v1628_v50 = vld [vmem:[#allocation8 + $0x8] sm:$0xff] }
 0x9ec   : > { %v1448_v60 = vpop.f32.mrf.mxu3  ;;  %1650 = vmatpush.msra.mxu3 %v1629_v49 }
 0x9ed   : > { %v1459_v58 = vsel %vm1458_vm3, %v2051_v45, %v1455_v54 }
 0x9ee   : > { %v1464_v61 = vsel %vm1461_vm6, %v1463_v56, %v1459_v58  ;;  %1651 = vmatpush.msra.mxu3 %v1628_v50  ;;  %v1678_v56 = vld [vmem:[%s2781_s17 + $0x60] sm:$0xff] }
 0x9ef   : > { %v1465_v63 = vmul.f32 %v1464_v61, %v1448_v60  ;;  %1688 = vmatpush.msrb.mxu2 %v1678_v56 }
 0x9f1   : > { %1556 = vrot.lane.b32.xlu2 %v1465_v63, %s2829_s19 }
 0x9f6   : > { %1552 = vrot.lane.b32.xlu1 %v1380_v2, %s2830_s3  ;;  %s2834_s3 = sld [smem:[#allocation29_spill]] }
 0x9fc   : > { %s1718_s20 = scalar_lea.hbm %s2834_s3, %s1887_s25  ;;  %s2200_s21 = scalar_lea.hbm %s2834_s3, 16 }
 0x9fd   : > { %s1722_s24 = sshll.u32 %s1718_s20, 4  ;;  %s1723_s24 = int_to_ptr.hbm [resolvable:$true] %s1722_s24 }
 0x9fe   : > { %s2194_s0 = sshra.s32 %s1723_s24, 4  ;;  %s2195_s0 = int_to_ptr.hbm [resolvable:$true] %s2194_s0 }
 0x9ff   : > { %s2196_s27 = scalar_lea.hbm %s2195_s0, 8  ;;  %p2201_p3 = scmp.lt.s32.totalorder %s2195_s0, %s2834_s3 }
 0xa00   : > { %p2197_p0 = scmp.ne.s32.totalorder %s2195_s0, %s2196_s27  ;;  %p2202_p4 = scmp.lt.s32.totalorder %s2200_s21, %s2196_s27 }
 0xa02   : > { %p2198_p1 = pnand %p2197_p0, %p2415_p5  ;;  %p2203_p7 = por %p2202_p4, %p2201_p3 }
 0xa04   : > { %p2199_p2 = pneg %p2198_p1 }
 0xa06   : > { %p2204_p8 = pnand %p2203_p7, %p2199_p2 }
 0xa4b   : > { %v1557_v35 = vpop.permute.xlu2 %1556 }
 0xa50   : > { %v1506_v7 = vpop.xlane.xlu1 %1505 }
 0xa51   : > { %2052 = vrcp.f32 %v1506_v7  ;;  %v1547_v12 = vand.u32 2147483648, %v1506_v7  ;;  %v1545_v14 = vand.u32 2147483647, %v1506_v7  ;;  %vm1541_vm11 = vweird.f32 %v1506_v7 }
 0xa52   : > { %2054 = vrcp.f32 %v1251_v20 }
 0xa53   : > { %v1548_v16 = vor.u32 1.1754944e-38, %v1547_v12  ;;  %vm1546_vm13 = vcmp.eq.f32.partialorder %v1545_v14, 8.507059e+37  ;;  %v1673_v12 = vld [vmem:[%s2781_s17 + $0x38] sm:$0xff]  ;;  %v1671_v14 = vld [vmem:[%s2781_s17 + $0x28] sm:$0xff] }
 0xa57   : > { %v2053_v9 = vpop.eup %2052 }
 0xa58   : > { %v1537_v10 = vmul.f32 %v2053_v9, %v1506_v7  ;;  %vm1542_vm10 = vweird.f32 %v2053_v9  ;;  %v2055_v21 = vpop.eup %2054  ;;  %v1677_v7 = vld [vmem:[%s2781_s17 + $0x58] sm:$0xff] }
 0xa59   : > { %vm1543_vm12 = vmor %vm1541_vm11, %vm1542_vm10  ;;  %v1533_v18 = vpop.f32.mrf.mxu0  ;;  %v1282_v22 = vmul.f32 %v2055_v21, %v1251_v20  ;;  %vm1287_vm14 = vweird.f32 %v2055_v21  ;;  %1689 = vmatpush.msrb.mxu2 %v1677_v7 }
 0xa5a   : > { %v1538_v11 = vsub.f32 1.0, %v1537_v10  ;;  %vm1288_vm1 = vmor %vm1286_vm15, %vm1287_vm14  ;;  %v1675_v10 = vld [vmem:[%s2781_s17 + $0x48] sm:$0xff] }
 0xa5b   : > { %v1283_v24 = vsub.f32 1.0, %v1282_v22 }
 0xa5c   : > { %v1539_v13 = vmul.f32 %v2053_v9, %v1538_v11  ;;  %v1674_v11 = vld [vmem:[%s2781_s17 + $0x40] sm:$0xff] }
 0xa5d   : > { %v1284_v25 = vmul.f32 %v2055_v21, %v1283_v24 }
 0xa5e   : > { %v1540_v15 = vadd.f32 %v2053_v9, %v1539_v13  ;;  %v1672_v13 = vld [vmem:[%s2781_s17 + $0x30] sm:$0xff] }
 0xa5f   : > { %v1285_v26 = vadd.f32 %v2055_v21, %v1284_v25 }
 0xa60   : > { %v1544_v17 = vsel %vm1543_vm12, %v2053_v9, %v1540_v15  ;;  %v1676_v9 = vld [vmem:[%s2781_s17 + $0x50] sm:$0xff]  ;;  %v1670_v15 = vld [vmem:[%s2781_s17 + $0x20] sm:$0xff] }
 0xa61   : > { %v1549_v0 = vsel %vm1546_vm13, %v1548_v16, %v1544_v17  ;;  %v1289_v29 = vsel %vm1288_vm1, %v2055_v21, %v1285_v26  ;;  %1690 = vmatpush.msrb.mxu2 %v1676_v9  ;;  %v1669_v16 = vld [vmem:[%s2781_s17 + $0x18] sm:$0xff]  ;;  %v1668_v17 = vld [vmem:[%s2781_s17 + $0x10] sm:$0xff] }
 0xa62   : > { %v1550_v19 = vmul.f32 %v1549_v0, %v1533_v18  ;;  %v1294_v31 = vsel %vm1291_vm2, %v1293_v30, %v1289_v29  ;;  %v1667_v18 = vld [vmem:[%s2781_s17 + $0x8] sm:$0xff]  ;;  %v1666_v0 = vld [vmem:[%s2781_s17] sm:$0xff] }
 0xa63   : > { %v1295_v33 = vmul.f32 %v1294_v31, %v2640_v23  ;;  %1691 = vmatpush.msrb.mxu2 %v1675_v10 }
 0xa64   : > { %1560 = vrot.lane.b32.xlu0 %v1550_v19, %s2831_s23  ;;  %v2016_v19 = vld [vmem:[%s2832_s9] ss:$0 sm:$0xff] }
 0xa65   : > { %1692 = vmatpush.msrb.mxu2 %v1674_v11 }
 0xa67   : > { %1693 = vmatpush.msrb.mxu2 %v1673_v12 }
 0xa68   : > { %v1553_v32 = vpop.permute.xlu1 %1552 }
 0xa69   : > { %v1563_v34 = vsel %vm764_vm5, %v1295_v33, %v1553_v32  ;;  %1694 = vmatpush.msrb.mxu2 %v1672_v13  ;;  %v2017_v32 = vld [vmem:[%s2833_s29] ss:$0 sm:$0xff] }
 0xa6a   : > { %v1564_v37 = vsel %vm1086_vm8, %v1563_v34, %v1557_v35 }
 0xa6b   : > { %1695 = vmatpush.msrb.mxu2 %v1671_v14 }
 0xa6d   : > { %1696 = vmatpush.msrb.mxu2 %v1670_v15 }
 0xa6f   : > { %1697 = vmatpush.msrb.mxu2 %v1669_v16 }
 0xa71   : > { %1698 = vmatpush.msrb.mxu2 %v1668_v17 }
 0xa73   : > { %1699 = vmatpush.msrb.mxu2 %v1667_v18 }
 0xa75   : > { %1700 = vmatpush.msrb.mxu2 %v1666_v0 }
 0xad6   : > { %v1561_v36 = vpop.permute.xlu0 %1560 }
 0xad7   : > { %v1565_v38 = vsel %vm1088_vm9, %v1564_v37, %v1561_v36 }
 0xad8   : > { %1884 = vmatmul.msk.f32.vlgmr.msra.gmra.mxu1 %vm696_vm0, %v1565_v38 }
 0xb55   : > { %v1593_v40 = vpop.f32.mrf.mxu1 }
 0xb56   : > { %v1594_v41 = vadd.f32 %v2013_v39, %v1593_v40 }
 0xb58   : > { %v2661_v42 = vadd.f32 %v1594_v41, %v2573_v57  ;;  %v1627_v57 = vld [vmem:[#allocation8] sm:$0xff] }
 0xb59   : > { %1652 = vmatpush.msra.mxu3 %v1627_v57 }
 0xb5a   : > { %v1597_v23 = vsel %vm696_vm0, %v2661_v42, 0.0 }
 0xb5b   : > { %1598 = vadd.xlane.f32.xlu1 %v1597_v23 }
 0xbce   : > { %v1599_v43 = vpop.xlane.xlu1 %1598 }
 0xbcf   : > { %v1600_v44 = vmul.f32 %v1599_v43, %v2484_v8 }
 0xbd1   : > { %v1601_v45 = vsub.f32 %v2661_v42, %v1600_v44 }
 0xbd3   : > { %v1602_v46 = vmul.f32 %v1601_v45, %v1601_v45 }
 0xbd5   : > { %v1603_v47 = vsel %vm696_vm0, %v1602_v46, 0.0 }
 0xbd6   : > { %1604 = vadd.xlane.f32.xlu2 %v1603_v47 }
 0xc49   : > { %v1605_v54 = vpop.xlane.xlu2 %1604 }
 0xc4a   : > { %v1606_v55 = vmul.f32 %v1605_v54, %v2484_v8  ;;  %v2014_v8 = vld [vmem:[%s2777_s13] ss:$0 sm:$0xff] }
 0xc4c   : > { %v1607_v58 = vadd.f32 1e-05, %v1606_v55 }
 0xc4e   : > { %2056 = vrsqrt.f32 %v1607_v58  ;;  %vm1614_vm8 = vweird.f32 %v1607_v58 }
 0xc54   : > { %v2057_v59 = vpop.eup %2056 }
 0xc55   : > { %v1609_v60 = vmul.f32 %v2057_v59, %v1607_v58  ;;  %vm1615_vm5 = vweird.f32 %v2057_v59 }
 0xc56   : > { %vm1616_vm9 = vmor %vm1614_vm8, %vm1615_vm5 }
 0xc57   : > { %v1610_v61 = vmul.f32 %v2057_v59, %v1609_v60 }
 0xc59   : > { %v1611_v62 = vmul.f32 0.5, %v1610_v61 }
 0xc5b   : > { %v1612_v63 = vsub.f32 1.5, %v1611_v62 }
 0xc5d   : > { %v1613_v1 = vmul.f32 %v2057_v59, %v1612_v63 }
 0xc5f   : > { %v1617_v2 = vsel %vm1616_vm9, %v2057_v59, %v1613_v1 }
 0xc60   : > { %v1618_v3 = vmul.f32 %v1617_v2, %v1601_v45 }
 0xc62   : > { %v1622_v5 = vmul.f32 %v2014_v8, %v1618_v3 }
 0xc64   : > { %v1626_v6 = vadd.f32 %v2015_v4, %v1622_v5 }
 0xc66   : > { %1885 = vmatmul.msk.f32.vlgmr.msra.gmra.mxu3 %vm696_vm0, %v1626_v6 }
 0xce9   : > { %v1654_v20 = vpop.f32.mrf.mxu3 }
 0xcea   : > { %v1655_v21 = vadd.f32 %v2016_v19, %v1654_v20 }
 0xcec   : > { %v1658_v22 = vmul.f32 0.044715, %v1655_v21  ;;  %v1657_v29 = vmul.f32 0.5, %v1655_v21 }
 0xcee   : > { %v1659_v24 = vmul.f32 %v1658_v22, %v1655_v21 }
 0xcf0   : > { %v1660_v25 = vmul.f32 %v1659_v24, %v1655_v21 }
 0xcf2   : > { %v1661_v26 = vadd.f32 %v1660_v25, %v1655_v21 }
 0xcf4   : > { %v1662_v27 = vmul.f32 0.7978846, %v1661_v26 }
 0xcf6   : > { %2058 = vtanh.f32 %v1662_v27 }
 0xcfc   : > { %v2059_v28 = vpop.eup %2058 }
 0xcfd   : > { %v1664_v30 = vadd.f32 1.0, %v2059_v28 }
 0xcff   : > { %v1665_v31 = vmul.f32 %v1664_v30, %v1657_v29 }
 0xd01   : > { %1701 = vmatmul.f32.vlgmr.msrb.gmra.mxu2 %v1665_v31 }
 0xd84   : > { %v1702_v33 = vpop.f32.mrf.mxu2 }
 0xd85   : > { %v1703_v34 = vadd.f32 %v2017_v32, %v1702_v33 }
 0xd87   : > { %v1705_v35 = vadd.f32 %v1703_v34, %v2661_v42 }
 0xd89   : > { %1706 = vst.msk [vmem:[%s673_s2] sm:$0xff] %vm696_vm0, %v1705_v35 }
 0xd8a   : > { %2207 = shalt.err (!%p2204_p8)
}
 0xd8b   : > { %1907 = dma.vmem_to_hbm [thread:$0]  (%p2415_p5), %s1721_s22, 128, %s1723_s24, %s1708_s1  }
 0xd8c PF: > { %s2836_s18 = sld [smem:[#allocation17_spill]] }
 0xd8d   : > { %s2837_s29 = sld [smem:[#allocation15_spill]] }
 0xd92   : > { %p1934_p9 = scmp.ge.s32.totalorder %s2836_s18, 2 }
 0xd93   : > { %s1734_s19 = sand.u32 1, %s2837_s29  }
 0xd94   : > { %p1923_p10 = pnand %p1934_p9, %p2419_p6  ;;  %s1735_s20 = scalar_lea.sflag [#allocation4], %s1734_s19 }
 0xd96   : > { %p1924_p11 = pneg %p1923_p10 }
 0xd98   : > { %2237 = dma.done.wait (%p1924_p11), %s1735_s20, 128  }
 0xd99   : > { %2239 = vsyncadd (%p1924_p11), %s1735_s20, 4294967168  ;;  %s2839_s21 = sld [smem:[#allocation18_spill]]  ;;  %s2842_s0 = smov %s2246_s30 }
 0xd9a   : > { %s2840_s2 = sld [smem:[#allocation16_spill]] }
 0xd9b   : > { %s2841_s20 = sld [smem:[#allocation19_spill]] }
 0xd9f   : > { %p32_p12 = scmp.ge.s32.totalorder %s2839_s21, 4  }
 0xda0   : > { %s2843_s30 = smov %s2840_s2 }
 0xda1   :  { %34 = sbr.rel (!%p32_p12) target bundleno = 15 (0xf), region = 151 }
 0xda6   :  { %1741 = vsyncpa [#allocation3], 1 }
 0xda7   :  { %1743 = vsyncpa [#allocation3 + $0x1], 1 }
 0xda8   :  { %1744 = vsyncpa [#allocation6], 1 }
 0xda9   :  { %1745 = vsyncpa [#allocation9], 1 }
 0xdaa   :  { %1746 = vsyncpa [#allocation4], 1 }
 0xdab   :  { %1748 = vsyncpa [#allocation4 + $0x1], 1 }

</bundles_post_ra>
